<compile_context>
chip_gen: v6e
topology: v6e:2x2x1
jax: 0.10.0
libtpu: 0.0.40
codegen_flags: <defaults>
</compile_context>

<pallas_src>
import functools
import math

import jax
import jax.numpy as jnp
from jax.experimental import pallas as pl
from jax.experimental.pallas import tpu as pltpu


def _round_up(a: int, b: int) -> int:
    return ((a + b - 1) // b) * b


def _vmem_cap_bytes() -> int:
    try:
        return int(pltpu.get_tpu_info().vmem_capacity_bytes)
    except Exception:
        return 64 << 20  # conservative: v7x per-TC VMEM


# ---------------------------------------------------------------------------
# Kernels
# ---------------------------------------------------------------------------

def _fused_w_kernel(x_ref, w_ref, b_ref, o_ref, *, apply_relu, compute_dtype):
    # Single MXU matmul per (M,N) tile, f32 epilogue, lane-dense store.
    x = x_ref[...]
    if x.dtype != compute_dtype:
        x = x.astype(compute_dtype)  # in-kernel cast: VPU, no extra HBM pass
    y = jnp.dot(x, w_ref[...], preferred_element_type=jnp.float32)
    y = y + b_ref[...].astype(jnp.float32)
    if apply_relu:
        y = jnp.maximum(y, 0.0)
    o_ref[...] = y.astype(o_ref.dtype)


def _lowrank_kernel(x_ref, l_ref, r_ref, b_ref, o_ref, *, apply_relu, compute_dtype):
    # Two-step low-rank path: (x @ L) @ R + bias in one body.
    # HBM traffic is rank*(in+out) instead of in*out for the weight.
    x = x_ref[...]
    if x.dtype != compute_dtype:
        x = x.astype(compute_dtype)
    y1 = jnp.dot(x, l_ref[...], preferred_element_type=jnp.float32)   # (tm, rank)
    if compute_dtype != jnp.float32:
        y1 = y1.astype(compute_dtype)
    y = jnp.dot(y1, r_ref[...], preferred_element_type=jnp.float32)   # (tm, tn)
    y = y + b_ref[...].astype(jnp.float32)
    if apply_relu:
        y = jnp.maximum(y, 0.0)
    o_ref[...] = y.astype(o_ref.dtype)


# ---------------------------------------------------------------------------
# Wrapper
# ---------------------------------------------------------------------------

def lowrank_relu_forward(
    x,
    weight_left,
    weight_right,
    bias=None,
    *,
    tile_m=None,
    tile_n=None,
    matmul_dtype=None,
    nonlinearity="relu",
    mode="auto",          # "auto" | "fused" | "lowrank"
):
    """relu((x @ (weight_left @ weight_right)) + bias), x: (..., in_features)."""
    in_features, rank = weight_left.shape
    rank2, out_features = weight_right.shape
    assert rank == rank2 and x.shape[-1] == in_features

    if nonlinearity == "relu":
        apply_relu = True
    elif nonlinearity is None or nonlinearity == "none":
        apply_relu = False
    else:
        raise ValueError(f"unsupported nonlinearity: {nonlinearity!r}")

    out_dtype = x.dtype
    compute_dtype = (
        jnp.dtype(matmul_dtype) if matmul_dtype is not None else jnp.dtype(x.dtype)
    )

    lead_shape = x.shape[:-1]
    x2d = x.reshape(-1, in_features)
    M = x2d.shape[0]

    # --- N tiling: lane-dense output tiles (multiples of 128) ---------------
    N_r128 = _round_up(out_features, 128)
    if tile_n is None:
        tile_n = 512
    tile_n = max(128, _round_up(int(tile_n), 128))
    tn = min(tile_n, N_r128)
    N_pad = _round_up(out_features, tn)

    # --- M tiling: big tiles, but >=2 grid steps when possible (v7x 2 TCs) ---
    if tile_m is None:
        tile_m = 1024 if tn <= 256 else 512
    tile_m = max(8, _round_up(int(tile_m), 8))
    M_r8 = _round_up(max(M, 1), 8)
    tm = min(tile_m, M_r8)
    if tm >= M_r8 and M_r8 > 8:
        tm = _round_up((M_r8 + 1) // 2, 8)
    M_pad = _round_up(M_r8, tm)
    if M_pad != M:
        x2d = jnp.pad(x2d, ((0, M_pad - M), (0, 0)))
    grid = (M_pad // tm, N_pad // tn)

    # --- bias (f32, padded lanes) --------------------------------------------
    if bias is None:
        bias2d = jnp.zeros((1, N_pad), jnp.float32)
    else:
        bias2d = bias.astype(jnp.float32).reshape(1, out_features)
        if N_pad != out_features:
            bias2d = jnp.pad(bias2d, ((0, 0), (0, N_pad - out_features)))

    isz_c = compute_dtype.itemsize
    isz_x = jnp.dtype(x2d.dtype).itemsize
    isz_o = jnp.dtype(out_dtype).itemsize

    # --- path dispatch --------------------------------------------------------
    dense_w_bytes = in_features * N_pad * isz_c
    lowrank_bytes = rank * (in_features + N_pad) * isz_c
    if mode == "auto":
        use_lowrank = (dense_w_bytes > (8 << 20)) and (dense_w_bytes > 4 * lowrank_bytes)
    elif mode == "fused":
        use_lowrank = False
    elif mode == "lowrank":
        use_lowrank = True
    else:
        raise ValueError(f"unsupported mode: {mode!r}")

    vmem_cap = _vmem_cap_bytes()

    def _vmem_limit(needed):
        return int(min(max(needed, 8 << 20), max(8 << 20, int(vmem_cap * 0.6))))

    def _maybe_single_buffer(block_shape, index_map, single_buffer):
        if single_buffer:
            return pl.BlockSpec(block_shape, index_map, pipeline_mode=pl.Buffered(1))
        return pl.BlockSpec(block_shape, index_map)

    compiler_params = lambda vl: pltpu.CompilerParams(
        dimension_semantics=("parallel", "parallel"),
        vmem_limit_bytes=vl,
    )

    if not use_lowrank:
        # -------- fused dense-W path (small / medium feature dims) ----------
        W = jnp.dot(weight_left, weight_right, preferred_element_type=jnp.float32)
        if N_pad != out_features:
            W = jnp.pad(W, ((0, 0), (0, N_pad - out_features)))
        W = W.astype(compute_dtype)

        kernel = functools.partial(
            _fused_w_kernel, apply_relu=apply_relu, compute_dtype=compute_dtype)

        vmem_needed = (
            2 * tm * in_features * isz_x        # x tile (double-buffered)
            + in_features * tn * isz_c          # W tile (single-buffered when invariant)
            + 2 * tn * 4                        # bias tile
            + 2 * tm * tn * isz_o               # out tile (double-buffered)
            + (2 << 20)                         # headroom
        )
        vmem_limit = _vmem_limit(vmem_needed)
        cost = pl.CostEstimate(
            flops=2 * M_pad * in_features * N_pad,
            transcendentals=0,
            bytes_accessed=(M_pad * in_features * isz_x + in_features * N_pad * isz_c
                            + N_pad * 4 + M_pad * N_pad * isz_o),
        )

        def build(single_buffer_w):
            return pl.pallas_call(
                kernel,
                out_shape=jax.ShapeDtypeStruct((M_pad, N_pad), out_dtype),
                grid_spec=pltpu.PrefetchScalarGridSpec(
                    num_scalar_prefetch=0,
                    grid=grid,
                    in_specs=[
                        pl.BlockSpec((tm, in_features), lambda i, j: (i, 0)),
                        _maybe_single_buffer((in_features, tn), lambda i, j: (0, j),
                                             single_buffer_w),
                        pl.BlockSpec((1, tn), lambda i, j: (0, j)),
                    ],
                    out_specs=pl.BlockSpec((tm, tn), lambda i, j: (i, j)),
                ),
                compiler_params=compiler_params(vmem_limit),
                cost_estimate=cost,
            )

        prefer_single_w = grid[1] == 1  # W is grid-invariant only with one N tile
        try:
            out2d = build(prefer_single_w)(x2d, W, bias2d)
        except Exception:
            out2d = build(False)(x2d, W, bias2d)

    else:
        # -------- two-step low-rank path (large feature dims) ---------------
        L = weight_left.astype(compute_dtype)
        R = weight_right
        if N_pad != out_features:
            R = jnp.pad(R, ((0, 0), (0, N_pad - out_features)))
        R = R.astype(compute_dtype)

        kernel = functools.partial(
            _lowrank_kernel, apply_relu=apply_relu, compute_dtype=compute_dtype)

        vmem_needed = (
            2 * tm * in_features * isz_x        # x tile
            + in_features * rank * isz_c        # L (single-buffered, grid-invariant)
            + 2 * rank * tn * isz_c             # R tile
            + 2 * tn * 4                        # bias tile
            + 2 * tm * tn * isz_o               # out tile
            + tm * max(rank, 128) * 4           # y1 intermediate
            + (2 << 20)
        )
        vmem_limit = _vmem_limit(vmem_needed)
        cost = pl.CostEstimate(
            flops=2 * M_pad * rank * (in_features + N_pad),
            transcendentals=0,
            bytes_accessed=(M_pad * in_features * isz_x
                            + rank * (in_features + N_pad) * isz_c
                            + N_pad * 4 + M_pad * N_pad * isz_o),
        )

        def build(single_buffer_l):
            return pl.pallas_call(
                kernel,
                out_shape=jax.ShapeDtypeStruct((M_pad, N_pad), out_dtype),
                grid_spec=pltpu.PrefetchScalarGridSpec(
                    num_scalar_prefetch=0,
                    grid=grid,
                    in_specs=[
                        pl.BlockSpec((tm, in_features), lambda i, j: (i, 0)),
                        _maybe_single_buffer((in_features, rank), lambda i, j: (0, 0),
                                             single_buffer_l),
                        pl.BlockSpec((rank, tn), lambda i, j: (0, j)),
                        pl.BlockSpec((1, tn), lambda i, j: (0, j)),
                    ],
                    out_specs=pl.BlockSpec((tm, tn), lambda i, j: (i, j)),
                ),
                compiler_params=compiler_params(vmem_limit),
                cost_estimate=cost,
            )

        try:
            out2d = build(True)(x2d, L, R, bias2d)
        except Exception:
            out2d = build(False)(x2d, L, R, bias2d)

    if M_pad != M or N_pad != out_features:
        out2d = out2d[:M, :out_features]
    return out2d.reshape(*lead_shape, out_features)


# ---------------------------------------------------------------------------
# Parameter init (kaiming_uniform(a=sqrt(5)) bounds, matching the PyTorch module)
# ---------------------------------------------------------------------------

def init_params(key, in_features, out_features, rank):
    k_l, k_r, k_b = jax.random.split(key, 3)
    bound_l = 1.0 / math.sqrt(rank)           # weight_left: (in_features, rank)
    bound_r = 1.0 / math.sqrt(out_features)   # weight_right: (rank, out_features)
    weight_left = jax.random.uniform(
        k_l, (in_features, rank), jnp.float32, -bound_l, bound_l)
    weight_right = jax.random.uniform(
        k_r, (rank, out_features), jnp.float32, -bound_r, bound_r)
    bias_bound = 1.0 / math.sqrt(rank)        # fan_in of weight_left, as in the module
    bias = jax.random.uniform(
        k_b, (out_features,), jnp.float32, -bias_bound, bias_bound)
    return weight_left, weight_right, bias


if __name__ == "__main__":
    in_features, out_features, rank = 64, 128, 32

    key = jax.random.PRNGKey(0)
    k_x, k_x2, k_p = jax.random.split(key, 3)
    weight_left, weight_right, bias = init_params(k_p, in_features, out_features, rank)
    W_ref = weight_left @ weight_right

    # 1) Main fused path: M = 2048 rows -> 2 parallel M steps (tile_m=1024), f32.
    x = jax.random.normal(k_x, (2, 1024, in_features), jnp.float32)
    out = jax.block_until_ready(lowrank_relu_forward(x, weight_left, weight_right, bias))
    ref = jnp.maximum(x @ W_ref + bias, 0.0)
    assert out.shape == (2, 1024, out_features)
    assert jnp.allclose(out, ref, atol=1e-5, rtol=1e-5)

    # 2) Ragged leading dims (exercises M padding + 2-step M grid), f32.
    x2 = jax.random.normal(k_x2, (3, 7, in_features), jnp.float32)
    out2 = jax.block_until_ready(lowrank_relu_forward(x2, weight_left, weight_right, bias))
    ref2 = jnp.maximum(x2 @ W_ref + bias, 0.0)
    assert jnp.allclose(out2, ref2, atol=1e-5, rtol=1e-5)

    # 3) bf16 matmul fast path (v6e/v7x), in-kernel cast, f32 accumulation.
    out_bf16 = jax.block_until_ready(
        lowrank_relu_forward(x, weight_left, weight_right, bias,
                             matmul_dtype=jnp.bfloat16))
    assert jnp.allclose(out_bf16, ref, atol=5e-2, rtol=5e-2)

    # 4) Forced two-step low-rank path (the large-dim dispatch target), f32.
    out_lr = jax.block_until_ready(
        lowrank_relu_forward(x, weight_left, weight_right, bias, mode="lowrank"))
    assert jnp.allclose(out_lr, ref, atol=1e-4, rtol=1e-4)

    # 5) bias=None and nonlinearity='none'.
    out_nb = jax.block_until_ready(
        lowrank_relu_forward(x2, weight_left, weight_right, None, nonlinearity="none"))
    assert jnp.allclose(out_nb, x2 @ W_ref, atol=1e-5, rtol=1e-5)

    print("KERNEL_OK")
</pallas_src>

<mosaic_0001>
module attributes {stable_mosaic.version = 11 : i64} {
  func.func @_fused_w_kernel(%arg0: i32, %arg1: i32, %arg2: memref<1024x64xf32, #tpu.memory_space<vmem>>, %arg3: memref<64x128xf32, #tpu.memory_space<vmem>>, %arg4: memref<1x128xf32, #tpu.memory_space<vmem>>, %arg5: memref<1024x128xf32, #tpu.memory_space<vmem>>) attributes {dimension_semantics = [#tpu.dimension_semantics<parallel>, #tpu.dimension_semantics<parallel>], iteration_bounds = array<i64: 2, 1>, scalar_prefetch = 0 : i64, scratch_operands = 0 : i64, tpu.core_type = #tpu.core_type<tc>, window_params = [{transform_indices = @transform_0, window_bounds = array<i64: 1024, 64>}, {pipeline_mode = #tpu.pipeline_mode<synchronous>, transform_indices = @transform_1, window_bounds = array<i64: 64, 128>}, {transform_indices = @transform_2, window_bounds = array<i64: 1, 128>}, {transform_indices = @transform_3, window_bounds = array<i64: 1024, 128>}]} {
    %c0 = arith.constant 0 : index
    %c0_0 = arith.constant 0 : index
    %0 = vector.load %arg2[%c0, %c0_0] : memref<1024x64xf32, #tpu.memory_space<vmem>>, vector<1024x64xf32>
    %c0_1 = arith.constant 0 : index
    %c0_2 = arith.constant 0 : index
    %1 = vector.load %arg3[%c0_1, %c0_2] : memref<64x128xf32, #tpu.memory_space<vmem>>, vector<64x128xf32>
    %cst = arith.constant dense<0.000000e+00> : vector<1024x128xf32>
    %2 = tpu.matmul %0, %1, %cst {dimension_numbers = #tpu.dot_dimension_numbers<[1], [0], [0], [1], [0, 0, 1, 1], [], []>} : vector<1024x64xf32>, vector<64x128xf32>, vector<1024x128xf32> -> vector<1024x128xf32>
    %c0_3 = arith.constant 0 : index
    %c0_4 = arith.constant 0 : index
    %3 = vector.load %arg4[%c0_3, %c0_4] : memref<1x128xf32, #tpu.memory_space<vmem>>, vector<1x128xf32>
    %4 = vector.broadcast %3 : vector<1x128xf32> to vector<1024x128xf32>
    %5 = arith.addf %2, %4 : vector<1024x128xf32>
    %cst_5 = arith.constant 0.000000e+00 : f32
    %6 = vector.broadcast %cst_5 : f32 to vector<1024x128xf32>
    %7 = arith.maximumf %5, %6 : vector<1024x128xf32>
    %c0_6 = arith.constant 0 : index
    %c0_7 = arith.constant 0 : index
    %8 = vector.load %arg5[%c0_6, %c0_7] : memref<1024x128xf32, #tpu.memory_space<vmem>>, vector<1024x128xf32>
    tpu.vector_store %arg5[%c0_6, %c0_7], %7 {strides = array<i32>} : memref<1024x128xf32, #tpu.memory_space<vmem>>, vector<1024x128xf32>,
    return
  }
  func.func @transform_0(%arg0: i32, %arg1: i32) -> (i32, i32) {
    %c0_i32 = arith.constant 0 : i32
    %c0_i32_0 = arith.constant 0 : i32
    return %arg0, %c0_i32 : i32, i32
  }
  func.func @transform_1(%arg0: i32, %arg1: i32) -> (i32, i32) {
    %c0_i32 = arith.constant 0 : i32
    %c0_i32_0 = arith.constant 0 : i32
    return %c0_i32, %arg1 : i32, i32
  }
  func.func @transform_2(%arg0: i32, %arg1: i32) -> (i32, i32) {
    %c0_i32 = arith.constant 0 : i32
    %c0_i32_0 = arith.constant 0 : i32
    return %c0_i32, %arg1 : i32, i32
  }
  func.func @transform_3(%arg0: i32, %arg1: i32) -> (i32, i32) {
    %c0_i32 = arith.constant 0 : i32
    return %arg0, %arg1 : i32, i32
  }
}

module attributes {stable_mosaic.version = 11 : i64} {
  func.func @_fused_w_kernel(%arg0: i32, %arg1: i32, %arg2: memref<1024x64xf32, #tpu.memory_space<vmem>>, %arg3: memref<64x128xf32, #tpu.memory_space<vmem>>, %arg4: memref<1x128xf32, #tpu.memory_space<vmem>>, %arg5: memref<1024x128xf32, #tpu.memory_space<vmem>>) attributes {dimension_semantics = [#tpu.dimension_semantics<parallel>, #tpu.dimension_semantics<parallel>], iteration_bounds = array<i64: 2, 1>, scalar_prefetch = 0 : i64, scratch_operands = 0 : i64, tpu.core_type = #tpu.core_type<tc>, window_params = [{transform_indices = @transform_0, window_bounds = array<i64: 1024, 64>}, {transform_indices = @transform_1, window_bounds = array<i64: 64, 128>}, {transform_indices = @transform_2, window_bounds = array<i64: 1, 128>}, {transform_indices = @transform_3, window_bounds = array<i64: 1024, 128>}]} {
    %c0 = arith.constant 0 : index
    %c0_0 = arith.constant 0 : index
    %0 = vector.load %arg2[%c0, %c0_0] : memref<1024x64xf32, #tpu.memory_space<vmem>>, vector<1024x64xf32>
    %c0_1 = arith.constant 0 : index
    %c0_2 = arith.constant 0 : index
    %1 = vector.load %arg3[%c0_1, %c0_2] : memref<64x128xf32, #tpu.memory_space<vmem>>, vector<64x128xf32>
    %cst = arith.constant dense<0.000000e+00> : vector<1024x128xf32>
    %2 = tpu.matmul %0, %1, %cst {dimension_numbers = #tpu.dot_dimension_numbers<[1], [0], [0], [1], [0, 0, 1, 1], [], []>} : vector<1024x64xf32>, vector<64x128xf32>, vector<1024x128xf32> -> vector<1024x128xf32>
    %c0_3 = arith.constant 0 : index
    %c0_4 = arith.constant 0 : index
    %3 = vector.load %arg4[%c0_3, %c0_4] : memref<1x128xf32, #tpu.memory_space<vmem>>, vector<1x128xf32>
    %4 = vector.broadcast %3 : vector<1x128xf32> to vector<1024x128xf32>
    %5 = arith.addf %2, %4 : vector<1024x128xf32>
    %cst_5 = arith.constant 0.000000e+00 : f32
    %6 = vector.broadcast %cst_5 : f32 to vector<1024x128xf32>
    %7 = arith.maximumf %5, %6 : vector<1024x128xf32>
    %c0_6 = arith.constant 0 : index
    %c0_7 = arith.constant 0 : index
    %8 = vector.load %arg5[%c0_6, %c0_7] : memref<1024x128xf32, #tpu.memory_space<vmem>>, vector<1024x128xf32>
    tpu.vector_store %arg5[%c0_6, %c0_7], %7 {strides = array<i32>} : memref<1024x128xf32, #tpu.memory_space<vmem>>, vector<1024x128xf32>,
    return
  }
  func.func @transform_0(%arg0: i32, %arg1: i32) -> (i32, i32) {
    %c0_i32 = arith.constant 0 : i32
    %c0_i32_0 = arith.constant 0 : i32
    return %arg0, %c0_i32 : i32, i32
  }
  func.func @transform_1(%arg0: i32, %arg1: i32) -> (i32, i32) {
    %c0_i32 = arith.constant 0 : i32
    %c0_i32_0 = arith.constant 0 : i32
    return %c0_i32, %arg1 : i32, i32
  }
  func.func @transform_2(%arg0: i32, %arg1: i32) -> (i32, i32) {
    %c0_i32 = arith.constant 0 : i32
    %c0_i32_0 = arith.constant 0 : i32
    return %c0_i32, %arg1 : i32, i32
  }
  func.func @transform_3(%arg0: i32, %arg1: i32) -> (i32, i32) {
    %c0_i32 = arith.constant 0 : i32
    return %arg0, %arg1 : i32, i32
  }
}

</mosaic_0001>

<bundles_post_ra>
// kernel: tpu_custom_call.1
= control target key start
LH: loop header
LB: loop body
LE: loop exit
PB: predicated region body
PF: predicated region fallthrough
CT: control target
= control target key end

     0   :  { %8 = vsyncpa [#allocation3], 0  ;;  %s3146_s0 = inlined_call_operand.vmem [shape: f32[2048,64], index: 0, kind: input, shape index: {}]   ;;  %s3147_s1 = inlined_call_operand.vmem [shape: f32[64,128], index: 1, kind: input, shape index: {}]   ;;  %s3148_s2 = inlined_call_operand.vmem [shape: f32[1,128], index: 2, kind: input, shape index: {}]   ;;  %s3149_s3 = inlined_call_operand.hbm [shape: f32[2048,128], index: 3, kind: output, shape index: {}]  }
   0x1   :  { %10 = vsyncpa [#allocation3 + $0x1], 0  ;;  %s2483_s12 = smov 0   ;;  %s2485_s13 = smov 0  }
   0x2   :  { %s2487_s14 = smov 0   ;;  %s2489_s15 = smov 0  }
   0x3   :  { %s2491_s16 = smov 0   ;;  %s2493_s17 = smov 0  }
   0x4 LB: > { %s1820_s18 = sadd.s32 4294967295, %s2458_s17   ;;  %s1821_s19 = sadd.s32 4294967294, %s2458_s17   ;;  %s2458_s17 = sphi %s2493_s17, %s16_s17   ;;  %s2454_s16 = sphi %s2491_s16, %s3156_s16   ;;  %s2450_s15 = sphi %s2489_s15, %s3155_s15   ;;  %s2446_s14 = sphi %s2487_s14, %s3154_s14   ;;  %s2442_s13 = sphi %s2485_s13, %s3153_s13   ;;  %s2438_s12 = sphi %s2483_s12, %s3152_s12  }
   0x5   : > { %s28_s20 = sadd.s32 1, %s2454_s16  ;;  %s115_s21 = sadd.s32 1, %s2446_s14 }
   0x6   : > { %p30_p0 = scmp.ge.s32.totalorder %s28_s20, 2  ;;  %p125_p1 = scmp.ne.s32.totalorder %s2446_s14, %s2442_s13 }
   0x7   : > { %p126_p2 = scmp.eq.s32.totalorder %s1820_s18, 1  ;;  %p131_p3 = scmp.ne.s32.totalorder %s2442_s13, %s2438_s12 }
   0x8   : > { %s3158_s20 = smov (%p30_p0, %s28_s20), 0  ;;  %p132_p5 = scmp.eq.s32.totalorder %s1821_s19, 1 }
   0x9   : > { %p2523_p4 = por %p126_p2, %p125_p1  ;;  %s110_s23 = ssub.s32 %s2454_s16, %s3158_s20 }
   0xa   : > { %p1826_p6 = scmp.ge.s32.totalorder %s2458_s17, 1  ;;  %p113_p7 = scmp.eq.s32.totalorder %s110_s23, 0 }
   0xb   : > { %p2530_p8 = por %p132_p5, %p131_p3  ;;  %p172_p9 = scmp.lt.s32.totalorder %s2458_s17, 3 }
   0xc   : > { %s2536_s25 = scalar_select %p113_p7, %s2446_s14, %s115_s21  }
   0xd   : > { %p173_p10 = pnand %p1826_p6, %p172_p9 }
   0xe   : > { %s1828_s30 = sshll.u32 (!%p173_p10), %s2450_s15, 7  ;;  %s1964_s8 = sshll.u32 (!%p173_p10), %s2450_s15, 14 }
   0xf   : > { %176 = sbr.rel (%p173_p10) target bundleno = 375 (0x177), region = 32  ;;  %p204_p11 = scmp.lt.s32.totalorder (!%p173_p10), %s1828_s30, 255 }
  0x10   : > { %s2460_s21 = smov (!%p173_p10), [#allocation2]  }
  0x11   : > { %s2386_s23 = sshll.u32 (!%p173_p10), %s2460_s21, 4  ;;  %s2387_s23 = int_to_ptr.vmem [resolvable:$false] %s2386_s23 }
  0x12   : > { %s2388_s26 = scalar_lea.vmem (!%p173_p10), %s2387_s23, 32768 }
  0x14   : > { %v352_v0 = vld [vmem:[%s3147_s1 + $0x38] sm:$0xff]  ;;  %v351_v1 = vld [vmem:[%s3147_s1 + $0x30] sm:$0xff]  ;;  %v350_v2 = vld [vmem:[%s3147_s1 + $0x28] sm:$0xff]  ;;  %s3160_s30 = smov (!%p204_p11, %s1828_s30), 255  ;;  %vm360_vm0 = vcmask 523264  }
  0x15   : > { %2101 = vmatprep.subr.mxu0 %v352_v0  ;;  %2309 = vmatprep.subr.mxu1 %v352_v0  ;;  %v349_v3 = vld [vmem:[%s3147_s1 + $0x20] sm:$0xff]  ;;  %v348_v4 = vld [vmem:[%s3147_s1 + $0x18] sm:$0xff]  ;;  %v347_v5 = vld [vmem:[%s3147_s1 + $0x10] sm:$0xff]  ;;  %s1829_s18 = sshll.u32 %s3160_s30, 3  ;;  %s200_s30 = sand.u32 1, %s2442_s13  }
  0x16   : > { %2102 = vmatpush3.msra.mxu0 %v352_v0  ;;  %2317 = vmatpush3.msra.mxu1 %v352_v0  ;;  %v346_v6 = vld [vmem:[%s3147_s1 + $0x8] sm:$0xff]  ;;  %s2563_s27 = scalar_lea.vmem %s3146_s0, %s1829_s18  ;;  %v345_v7 = vld [vmem:[%s3147_s1] sm:$0xff]  ;;  %s1827_s6 = sshll.u32 %s200_s30, 10 }
  0x17   : > { %2103 = vmatprep.subr.mxu0 %v351_v1  ;;  %2310 = vmatprep.subr.mxu1 %v351_v1  ;;  %v217_v8 = vld [vmem:[%s2563_s27] sm:$0xff]  ;;  %v218_v10 = vld [vmem:[%s2563_s27 + $0x8] sm:$0xff]  ;;  %v219_v12 = vld [vmem:[%s2563_s27 + $0x10] sm:$0xff]  ;;  %s2836_s7 = scalar_lea.vmem [#allocation2], %s1827_s6  ;;  %s3091_s18 = scalar_lea.hbm %s3149_s3, %s1964_s8 }
  0x18   : > { %2104 = vmatpush3.msra.mxu0 %v351_v1  ;;  %2318 = vmatpush3.msra.mxu1 %v351_v1  ;;  %v281_v9 = vld [vmem:[%s2563_s27 + $0x200] sm:$0xff]  ;;  %v282_v11 = vld [vmem:[%s2563_s27 + $0x208] sm:$0xff]  ;;  %v283_v13 = vld [vmem:[%s2563_s27 + $0x210] sm:$0xff]  ;;  %s1721_s9 = sshll.u32 %s2836_s7, 4  ;;  %s3101_s15 = scalar_lea.sflag [#allocation3], %s200_s30  ;;  %s3093_s9 = int_to_ptr.vmem [resolvable:$true] %s1721_s9 }
  0x19   : > { %2105 = vmatprep.subr.mxu0 %v350_v2  ;;  %2311 = vmatprep.subr.mxu1 %v350_v2  ;;  %v220_v14 = vld [vmem:[%s2563_s27 + $0x18] sm:$0xff]  ;;  %v221_v16 = vld [vmem:[%s2563_s27 + $0x20] sm:$0xff]  ;;  %v222_v18 = vld [vmem:[%s2563_s27 + $0x28] sm:$0xff]  ;;  %s2382_s19 = scalar_lea.vmem %s3093_s9, 16384  ;;  %p2389_p1 = scmp.lt.s32.totalorder %s3093_s9, %s2387_s23 }
  0x1a   : > { %2106 = vmatpush3.msra.mxu0 %v350_v2  ;;  %2319 = vmatpush3.msra.mxu1 %v350_v2  ;;  %v284_v15 = vld [vmem:[%s2563_s27 + $0x218] sm:$0xff]  ;;  %v285_v17 = vld [vmem:[%s2563_s27 + $0x220] sm:$0xff]  ;;  %v286_v19 = vld [vmem:[%s2563_s27 + $0x228] sm:$0xff]  ;;  %p2383_p12 = scmp.ne.s32.totalorder %s3093_s9, %s2382_s19  ;;  %p2390_p2 = scmp.lt.s32.totalorder %s2388_s26, %s2382_s19 }
  0x1b   : > { %2107 = vmatprep.subr.mxu0 %v349_v3  ;;  %2312 = vmatprep.subr.mxu1 %v349_v3  ;;  %v223_v20 = vld [vmem:[%s2563_s27 + $0x30] sm:$0xff]  ;;  %v224_v22 = vld [vmem:[%s2563_s27 + $0x38] sm:$0xff]  ;;  %v225_v24 = vld [vmem:[%s2563_s27 + $0x40] sm:$0xff] }
  0x1c   : > { %2108 = vmatpush3.msra.mxu0 %v349_v3  ;;  %2320 = vmatpush3.msra.mxu1 %v349_v3  ;;  %v287_v21 = vld [vmem:[%s2563_s27 + $0x230] sm:$0xff]  ;;  %v288_v23 = vld [vmem:[%s2563_s27 + $0x238] sm:$0xff]  ;;  %v289_v25 = vld [vmem:[%s2563_s27 + $0x240] sm:$0xff]  ;;  %p2384_p13 = pnand %p2383_p12, %p2523_p4  ;;  %p2391_p3 = por %p2390_p2, %p2389_p1 }
  0x1d   : > { %2109 = vmatprep.subr.mxu0 %v348_v4  ;;  %2313 = vmatprep.subr.mxu1 %v348_v4  ;;  %v226_v26 = vld [vmem:[%s2563_s27 + $0x48] sm:$0xff]  ;;  %v227_v28 = vld [vmem:[%s2563_s27 + $0x50] sm:$0xff]  ;;  %v228_v30 = vld [vmem:[%s2563_s27 + $0x58] sm:$0xff] }
  0x1e   : > { %2110 = vmatpush3.msra.mxu0 %v348_v4  ;;  %2321 = vmatpush3.msra.mxu1 %v348_v4  ;;  %v290_v27 = vld [vmem:[%s2563_s27 + $0x248] sm:$0xff]  ;;  %v291_v29 = vld [vmem:[%s2563_s27 + $0x250] sm:$0xff]  ;;  %v292_v31 = vld [vmem:[%s2563_s27 + $0x258] sm:$0xff]  ;;  %p2385_p0 = pneg %p2384_p13 }
  0x1f   : > { %2111 = vmatprep.subr.mxu0 %v347_v5  ;;  %2314 = vmatprep.subr.mxu1 %v347_v5  ;;  %v229_v32 = vld [vmem:[%s2563_s27 + $0x60] sm:$0xff]  ;;  %v230_v34 = vld [vmem:[%s2563_s27 + $0x68] sm:$0xff]  ;;  %v231_v36 = vld [vmem:[%s2563_s27 + $0x70] sm:$0xff] }
  0x20   : > { %2112 = vmatpush3.msra.mxu0 %v347_v5  ;;  %2322 = vmatpush3.msra.mxu1 %v347_v5  ;;  %v293_v33 = vld [vmem:[%s2563_s27 + $0x260] sm:$0xff]  ;;  %v294_v35 = vld [vmem:[%s2563_s27 + $0x268] sm:$0xff]  ;;  %v295_v37 = vld [vmem:[%s2563_s27 + $0x270] sm:$0xff]  ;;  %p2392_p5 = pnand %p2391_p3, %p2385_p0 }
  0x21   : > { %2113 = vmatprep.subr.mxu0 %v346_v6  ;;  %2315 = vmatprep.subr.mxu1 %v346_v6  ;;  %v232_v38 = vld [vmem:[%s2563_s27 + $0x78] sm:$0xff]  ;;  %v233_v40 = vld [vmem:[%s2563_s27 + $0x80] sm:$0xff]  ;;  %v234_v42 = vld [vmem:[%s2563_s27 + $0x88] sm:$0xff] }
  0x22   : > { %2114 = vmatpush3.msra.mxu0 %v346_v6  ;;  %2323 = vmatpush3.msra.mxu1 %v346_v6  ;;  %v296_v39 = vld [vmem:[%s2563_s27 + $0x278] sm:$0xff]  ;;  %v297_v41 = vld [vmem:[%s2563_s27 + $0x280] sm:$0xff]  ;;  %v298_v43 = vld [vmem:[%s2563_s27 + $0x288] sm:$0xff] }
  0x23   : > { %2115 = vmatprep.subr.mxu0 %v345_v7  ;;  %2316 = vmatprep.subr.mxu1 %v345_v7  ;;  %v235_v44 = vld [vmem:[%s2563_s27 + $0x90] sm:$0xff]  ;;  %v236_v46 = vld [vmem:[%s2563_s27 + $0x98] sm:$0xff]  ;;  %v237_v48 = vld [vmem:[%s2563_s27 + $0xa0] sm:$0xff] }
  0x24   : > { %2116 = vmatpush3.msra.mxu0 %v345_v7  ;;  %2324 = vmatpush3.msra.mxu1 %v345_v7  ;;  %v299_v45 = vld [vmem:[%s2563_s27 + $0x290] sm:$0xff]  ;;  %v300_v47 = vld [vmem:[%s2563_s27 + $0x298] sm:$0xff]  ;;  %v301_v49 = vld [vmem:[%s2563_s27 + $0x2a0] sm:$0xff] }
  0x25   : > { %2117 = vmatprep.mubr.msk.f32.mxu0 %vm360_vm0, %v217_v8  ;;  %2213 = vmatprep.mubr.msk.f32.mxu1 %vm360_vm0, %v281_v9  ;;  %v238_v50 = vld [vmem:[%s2563_s27 + $0xa8] sm:$0xff]  ;;  %v239_v52 = vld [vmem:[%s2563_s27 + $0xb0] sm:$0xff]  ;;  %v240_v54 = vld [vmem:[%s2563_s27 + $0xb8] sm:$0xff] }
  0x26   : > { %2118 = vmatmul.mubr.msk.f32.vlgmr.msra.gmra.mxu0 %vm360_vm0, %v218_v10  ;;  %2214 = vmatmul.mubr.msk.f32.vlgmr.msra.gmra.mxu1 %vm360_vm0, %v282_v11  ;;  %v302_v51 = vld [vmem:[%s2563_s27 + $0x2a8] sm:$0xff]  ;;  %v303_v53 = vld [vmem:[%s2563_s27 + $0x2b0] sm:$0xff]  ;;  %v304_v55 = vld [vmem:[%s2563_s27 + $0x2b8] sm:$0xff] }
  0x27   : > { %2120 = vmatprep.mubr.msk.f32.mxu0 %vm360_vm0, %v219_v12  ;;  %2216 = vmatprep.mubr.msk.f32.mxu1 %vm360_vm0, %v283_v13  ;;  %v241_v56 = vld [vmem:[%s2563_s27 + $0xc0] sm:$0xff]  ;;  %v242_v58 = vld [vmem:[%s2563_s27 + $0xc8] sm:$0xff]  ;;  %v243_v60 = vld [vmem:[%s2563_s27 + $0xd0] sm:$0xff] }
  0x28   : > { %v305_v57 = vld [vmem:[%s2563_s27 + $0x2c0] sm:$0xff]  ;;  %v306_v59 = vld [vmem:[%s2563_s27 + $0x2c8] sm:$0xff]  ;;  %v307_v61 = vld [vmem:[%s2563_s27 + $0x2d0] sm:$0xff] }
  0x29   : > { %v244_v62 = vld [vmem:[%s2563_s27 + $0xd8] sm:$0xff]  ;;  %v245_v0 = vld [vmem:[%s2563_s27 + $0xe0] sm:$0xff]  ;;  %v246_v2 = vld [vmem:[%s2563_s27 + $0xe8] sm:$0xff] }
  0x2a   : > { %2121 = vmatmul.mubr.msk.f32.gmra.mxu0 %vm360_vm0, %v220_v14  ;;  %2217 = vmatmul.mubr.msk.f32.gmra.mxu1 %vm360_vm0, %v284_v15  ;;  %v308_v63 = vld [vmem:[%s2563_s27 + $0x2d8] sm:$0xff]  ;;  %v309_v1 = vld [vmem:[%s2563_s27 + $0x2e0] sm:$0xff]  ;;  %v310_v3 = vld [vmem:[%s2563_s27 + $0x2e8] sm:$0xff] }
  0x2b   : > { %2123 = vmatprep.mubr.msk.f32.mxu0 %vm360_vm0, %v221_v16  ;;  %2219 = vmatprep.mubr.msk.f32.mxu1 %vm360_vm0, %v285_v17  ;;  %v247_v4 = vld [vmem:[%s2563_s27 + $0xf0] sm:$0xff]  ;;  %v248_v6 = vld [vmem:[%s2563_s27 + $0xf8] sm:$0xff]  ;;  %v249_v8 = vld [vmem:[%s2563_s27 + $0x100] sm:$0xff] }
  0x2c   : > { %v311_v5 = vld [vmem:[%s2563_s27 + $0x2f0] sm:$0xff]  ;;  %v312_v7 = vld [vmem:[%s2563_s27 + $0x2f8] sm:$0xff]  ;;  %v313_v9 = vld [vmem:[%s2563_s27 + $0x300] sm:$0xff] }
  0x2d   : > { %v250_v10 = vld [vmem:[%s2563_s27 + $0x108] sm:$0xff]  ;;  %v251_v12 = vld [vmem:[%s2563_s27 + $0x110] sm:$0xff]  ;;  %v252_v14 = vld [vmem:[%s2563_s27 + $0x118] sm:$0xff] }
  0x2e   : > { %2124 = vmatmul.mubr.msk.f32.gmra.mxu0 %vm360_vm0, %v222_v18  ;;  %2220 = vmatmul.mubr.msk.f32.gmra.mxu1 %vm360_vm0, %v286_v19  ;;  %v314_v11 = vld [vmem:[%s2563_s27 + $0x308] sm:$0xff]  ;;  %v315_v13 = vld [vmem:[%s2563_s27 + $0x310] sm:$0xff]  ;;  %v316_v15 = vld [vmem:[%s2563_s27 + $0x318] sm:$0xff] }
  0x2f   : > { %2126 = vmatprep.mubr.msk.f32.mxu0 %vm360_vm0, %v223_v20  ;;  %2222 = vmatprep.mubr.msk.f32.mxu1 %vm360_vm0, %v287_v21  ;;  %v253_v16 = vld [vmem:[%s2563_s27 + $0x120] sm:$0xff]  ;;  %v254_v18 = vld [vmem:[%s2563_s27 + $0x128] sm:$0xff]  ;;  %v255_v20 = vld [vmem:[%s2563_s27 + $0x130] sm:$0xff] }
  0x30   : > { %v317_v17 = vld [vmem:[%s2563_s27 + $0x320] sm:$0xff]  ;;  %v318_v19 = vld [vmem:[%s2563_s27 + $0x328] sm:$0xff]  ;;  %v319_v21 = vld [vmem:[%s2563_s27 + $0x330] sm:$0xff] }
  0x32   : > { %2127 = vmatmul.mubr.msk.f32.gmra.mxu0 %vm360_vm0, %v224_v22  ;;  %2223 = vmatmul.mubr.msk.f32.gmra.mxu1 %vm360_vm0, %v288_v23  ;;  %v256_v22 = vld [vmem:[%s2563_s27 + $0x138] sm:$0xff] }
  0x33   : > { %2129 = vmatprep.mubr.msk.f32.mxu0 %vm360_vm0, %v225_v24  ;;  %2225 = vmatprep.mubr.msk.f32.mxu1 %vm360_vm0, %v289_v25  ;;  %v320_v23 = vld [vmem:[%s2563_s27 + $0x338] sm:$0xff]  ;;  %v257_v24 = vld [vmem:[%s2563_s27 + $0x140] sm:$0xff] }
  0x34   : > { %v321_v25 = vld [vmem:[%s2563_s27 + $0x340] sm:$0xff] }
  0x36   : > { %2130 = vmatmul.mubr.msk.f32.gmra.mxu0 %vm360_vm0, %v226_v26  ;;  %2226 = vmatmul.mubr.msk.f32.gmra.mxu1 %vm360_vm0, %v290_v27  ;;  %v258_v26 = vld [vmem:[%s2563_s27 + $0x148] sm:$0xff] }
  0x37   : > { %2132 = vmatprep.mubr.msk.f32.mxu0 %vm360_vm0, %v227_v28  ;;  %2228 = vmatprep.mubr.msk.f32.mxu1 %vm360_vm0, %v291_v29  ;;  %v322_v27 = vld [vmem:[%s2563_s27 + $0x348] sm:$0xff]  ;;  %v259_v28 = vld [vmem:[%s2563_s27 + $0x150] sm:$0xff] }
  0x38   : > { %v323_v29 = vld [vmem:[%s2563_s27 + $0x350] sm:$0xff] }
  0x3a   : > { %2133 = vmatmul.mubr.msk.f32.gmra.mxu0 %vm360_vm0, %v228_v30  ;;  %2229 = vmatmul.mubr.msk.f32.gmra.mxu1 %vm360_vm0, %v292_v31  ;;  %v260_v30 = vld [vmem:[%s2563_s27 + $0x158] sm:$0xff] }
  0x3b   : > { %2135 = vmatprep.mubr.msk.f32.mxu0 %vm360_vm0, %v229_v32  ;;  %2231 = vmatprep.mubr.msk.f32.mxu1 %vm360_vm0, %v293_v33  ;;  %v324_v31 = vld [vmem:[%s2563_s27 + $0x358] sm:$0xff]  ;;  %v261_v32 = vld [vmem:[%s2563_s27 + $0x160] sm:$0xff] }
  0x3c   : > { %v325_v33 = vld [vmem:[%s2563_s27 + $0x360] sm:$0xff] }
  0x3e   : > { %2136 = vmatmul.mubr.msk.f32.gmra.mxu0 %vm360_vm0, %v230_v34  ;;  %2232 = vmatmul.mubr.msk.f32.gmra.mxu1 %vm360_vm0, %v294_v35  ;;  %v262_v34 = vld [vmem:[%s2563_s27 + $0x168] sm:$0xff] }
  0x3f   : > { %2138 = vmatprep.mubr.msk.f32.mxu0 %vm360_vm0, %v231_v36  ;;  %2234 = vmatprep.mubr.msk.f32.mxu1 %vm360_vm0, %v295_v37  ;;  %v326_v35 = vld [vmem:[%s2563_s27 + $0x368] sm:$0xff]  ;;  %v263_v36 = vld [vmem:[%s2563_s27 + $0x170] sm:$0xff] }
  0x40   : > { %v327_v37 = vld [vmem:[%s2563_s27 + $0x370] sm:$0xff] }
  0x42   : > { %2139 = vmatmul.mubr.msk.f32.gmra.mxu0 %vm360_vm0, %v232_v38  ;;  %2235 = vmatmul.mubr.msk.f32.gmra.mxu1 %vm360_vm0, %v296_v39  ;;  %v264_v38 = vld [vmem:[%s2563_s27 + $0x178] sm:$0xff] }
  0x43   : > { %2141 = vmatprep.mubr.msk.f32.mxu0 %vm360_vm0, %v233_v40  ;;  %2237 = vmatprep.mubr.msk.f32.mxu1 %vm360_vm0, %v297_v41  ;;  %v328_v39 = vld [vmem:[%s2563_s27 + $0x378] sm:$0xff]  ;;  %v265_v40 = vld [vmem:[%s2563_s27 + $0x180] sm:$0xff] }
  0x44   : > { %v329_v41 = vld [vmem:[%s2563_s27 + $0x380] sm:$0xff] }
  0x46   : > { %2142 = vmatmul.mubr.msk.f32.gmra.mxu0 %vm360_vm0, %v234_v42  ;;  %2238 = vmatmul.mubr.msk.f32.gmra.mxu1 %vm360_vm0, %v298_v43  ;;  %v266_v42 = vld [vmem:[%s2563_s27 + $0x188] sm:$0xff] }
  0x47   : > { %2144 = vmatprep.mubr.msk.f32.mxu0 %vm360_vm0, %v235_v44  ;;  %2240 = vmatprep.mubr.msk.f32.mxu1 %vm360_vm0, %v299_v45  ;;  %v330_v43 = vld [vmem:[%s2563_s27 + $0x388] sm:$0xff]  ;;  %v267_v44 = vld [vmem:[%s2563_s27 + $0x190] sm:$0xff] }
  0x48   : > { %v331_v45 = vld [vmem:[%s2563_s27 + $0x390] sm:$0xff] }
  0x4a   : > { %2145 = vmatmul.mubr.msk.f32.gmra.mxu0 %vm360_vm0, %v236_v46  ;;  %2241 = vmatmul.mubr.msk.f32.gmra.mxu1 %vm360_vm0, %v300_v47  ;;  %v268_v46 = vld [vmem:[%s2563_s27 + $0x198] sm:$0xff] }
  0x4b   : > { %2147 = vmatprep.mubr.msk.f32.mxu0 %vm360_vm0, %v237_v48  ;;  %2243 = vmatprep.mubr.msk.f32.mxu1 %vm360_vm0, %v301_v49  ;;  %v332_v47 = vld [vmem:[%s2563_s27 + $0x398] sm:$0xff]  ;;  %v269_v48 = vld [vmem:[%s2563_s27 + $0x1a0] sm:$0xff] }
  0x4c   : > { %v333_v49 = vld [vmem:[%s2563_s27 + $0x3a0] sm:$0xff] }
  0x4e   : > { %2148 = vmatmul.mubr.msk.f32.gmra.mxu0 %vm360_vm0, %v238_v50  ;;  %2244 = vmatmul.mubr.msk.f32.gmra.mxu1 %vm360_vm0, %v302_v51  ;;  %v270_v50 = vld [vmem:[%s2563_s27 + $0x1a8] sm:$0xff] }
  0x4f   : > { %2150 = vmatprep.mubr.msk.f32.mxu0 %vm360_vm0, %v239_v52  ;;  %2246 = vmatprep.mubr.msk.f32.mxu1 %vm360_vm0, %v303_v53  ;;  %v334_v51 = vld [vmem:[%s2563_s27 + $0x3a8] sm:$0xff]  ;;  %v271_v52 = vld [vmem:[%s2563_s27 + $0x1b0] sm:$0xff] }
  0x50   : > { %v335_v53 = vld [vmem:[%s2563_s27 + $0x3b0] sm:$0xff] }
  0x52   : > { %2151 = vmatmul.mubr.msk.f32.gmra.mxu0 %vm360_vm0, %v240_v54  ;;  %2247 = vmatmul.mubr.msk.f32.gmra.mxu1 %vm360_vm0, %v304_v55  ;;  %v272_v54 = vld [vmem:[%s2563_s27 + $0x1b8] sm:$0xff] }
  0x53   : > { %2153 = vmatprep.mubr.msk.f32.mxu0 %vm360_vm0, %v241_v56  ;;  %2249 = vmatprep.mubr.msk.f32.mxu1 %vm360_vm0, %v305_v57  ;;  %v336_v55 = vld [vmem:[%s2563_s27 + $0x3b8] sm:$0xff]  ;;  %v273_v56 = vld [vmem:[%s2563_s27 + $0x1c0] sm:$0xff] }
  0x54   : > { %v337_v57 = vld [vmem:[%s2563_s27 + $0x3c0] sm:$0xff] }
  0x56   : > { %2154 = vmatmul.mubr.msk.f32.gmra.mxu0 %vm360_vm0, %v242_v58  ;;  %2250 = vmatmul.mubr.msk.f32.gmra.mxu1 %vm360_vm0, %v306_v59  ;;  %v274_v58 = vld [vmem:[%s2563_s27 + $0x1c8] sm:$0xff] }
  0x57   : > { %2156 = vmatprep.mubr.msk.f32.mxu0 %vm360_vm0, %v243_v60  ;;  %2252 = vmatprep.mubr.msk.f32.mxu1 %vm360_vm0, %v307_v61  ;;  %v338_v59 = vld [vmem:[%s2563_s27 + $0x3c8] sm:$0xff]  ;;  %v275_v60 = vld [vmem:[%s2563_s27 + $0x1d0] sm:$0xff] }
  0x58   : > { %v339_v61 = vld [vmem:[%s2563_s27 + $0x3d0] sm:$0xff] }
  0x5a   : > { %2157 = vmatmul.mubr.msk.f32.gmra.mxu0 %vm360_vm0, %v244_v62  ;;  %2253 = vmatmul.mubr.msk.f32.gmra.mxu1 %vm360_vm0, %v308_v63  ;;  %v276_v62 = vld [vmem:[%s2563_s27 + $0x1d8] sm:$0xff] }
  0x5b   : > { %2159 = vmatprep.mubr.msk.f32.mxu0 %vm360_vm0, %v245_v0  ;;  %2255 = vmatprep.mubr.msk.f32.mxu1 %vm360_vm0, %v309_v1  ;;  %v340_v63 = vld [vmem:[%s2563_s27 + $0x3d8] sm:$0xff]  ;;  %v277_v0 = vld [vmem:[%s2563_s27 + $0x1e0] sm:$0xff] }
  0x5c   : > { %v341_v1 = vld [vmem:[%s2563_s27 + $0x3e0] sm:$0xff] }
  0x5e   : > { %2160 = vmatmul.mubr.msk.f32.gmra.mxu0 %vm360_vm0, %v246_v2  ;;  %2256 = vmatmul.mubr.msk.f32.gmra.mxu1 %vm360_vm0, %v310_v3  ;;  %v278_v2 = vld [vmem:[%s2563_s27 + $0x1e8] sm:$0xff] }
  0x5f   : > { %2162 = vmatprep.mubr.msk.f32.mxu0 %vm360_vm0, %v247_v4  ;;  %2258 = vmatprep.mubr.msk.f32.mxu1 %vm360_vm0, %v311_v5  ;;  %v342_v3 = vld [vmem:[%s2563_s27 + $0x3e8] sm:$0xff]  ;;  %v279_v4 = vld [vmem:[%s2563_s27 + $0x1f0] sm:$0xff] }
  0x60   : > { %v343_v5 = vld [vmem:[%s2563_s27 + $0x3f0] sm:$0xff] }
  0x62   : > { %2163 = vmatmul.mubr.msk.f32.gmra.mxu0 %vm360_vm0, %v248_v6  ;;  %2259 = vmatmul.mubr.msk.f32.gmra.mxu1 %vm360_vm0, %v312_v7  ;;  %v280_v6 = vld [vmem:[%s2563_s27 + $0x1f8] sm:$0xff] }
  0x63   : > { %2165 = vmatprep.mubr.msk.f32.mxu0 %vm360_vm0, %v249_v8  ;;  %2261 = vmatprep.mubr.msk.f32.mxu1 %vm360_vm0, %v313_v9  ;;  %v344_v7 = vld [vmem:[%s2563_s27 + $0x3f8] sm:$0xff]  ;;  %v2828_v8 = vld [vmem:[%s3148_s2] ss:$0 sm:$0xff] }
  0x66   : > { %2166 = vmatmul.mubr.msk.f32.gmra.mxu0 %vm360_vm0, %v250_v10  ;;  %2262 = vmatmul.mubr.msk.f32.gmra.mxu1 %vm360_vm0, %v314_v11 }
  0x67   : > { %2168 = vmatprep.mubr.msk.f32.mxu0 %vm360_vm0, %v251_v12  ;;  %2264 = vmatprep.mubr.msk.f32.mxu1 %vm360_vm0, %v315_v13 }
  0x6a   : > { %2169 = vmatmul.mubr.msk.f32.gmra.mxu0 %vm360_vm0, %v252_v14  ;;  %2265 = vmatmul.mubr.msk.f32.gmra.mxu1 %vm360_vm0, %v316_v15 }
  0x6b   : > { %2171 = vmatprep.mubr.msk.f32.mxu0 %vm360_vm0, %v253_v16  ;;  %2267 = vmatprep.mubr.msk.f32.mxu1 %vm360_vm0, %v317_v17 }
  0x6e   : > { %2172 = vmatmul.mubr.msk.f32.gmra.mxu0 %vm360_vm0, %v254_v18  ;;  %2268 = vmatmul.mubr.msk.f32.gmra.mxu1 %vm360_vm0, %v318_v19 }
  0x6f   : > { %2174 = vmatprep.mubr.msk.f32.mxu0 %vm360_vm0, %v255_v20  ;;  %2270 = vmatprep.mubr.msk.f32.mxu1 %vm360_vm0, %v319_v21 }
  0x72   : > { %2175 = vmatmul.mubr.msk.f32.gmra.mxu0 %vm360_vm0, %v256_v22  ;;  %2271 = vmatmul.mubr.msk.f32.gmra.mxu1 %vm360_vm0, %v320_v23 }
  0x73   : > { %2177 = vmatprep.mubr.msk.f32.mxu0 %vm360_vm0, %v257_v24  ;;  %2273 = vmatprep.mubr.msk.f32.mxu1 %vm360_vm0, %v321_v25 }
  0x76   : > { %2178 = vmatmul.mubr.msk.f32.gmra.mxu0 %vm360_vm0, %v258_v26  ;;  %2274 = vmatmul.mubr.msk.f32.gmra.mxu1 %vm360_vm0, %v322_v27 }
  0x77   : > { %2180 = vmatprep.mubr.msk.f32.mxu0 %vm360_vm0, %v259_v28  ;;  %2276 = vmatprep.mubr.msk.f32.mxu1 %vm360_vm0, %v323_v29 }
  0x7a   : > { %2181 = vmatmul.mubr.msk.f32.gmra.mxu0 %vm360_vm0, %v260_v30  ;;  %2277 = vmatmul.mubr.msk.f32.gmra.mxu1 %vm360_vm0, %v324_v31 }
  0x7b   : > { %2183 = vmatprep.mubr.msk.f32.mxu0 %vm360_vm0, %v261_v32  ;;  %2279 = vmatprep.mubr.msk.f32.mxu1 %vm360_vm0, %v325_v33 }
  0x7e   : > { %2184 = vmatmul.mubr.msk.f32.gmra.mxu0 %vm360_vm0, %v262_v34  ;;  %2280 = vmatmul.mubr.msk.f32.gmra.mxu1 %vm360_vm0, %v326_v35 }
  0x7f   : > { %2186 = vmatprep.mubr.msk.f32.mxu0 %vm360_vm0, %v263_v36  ;;  %2282 = vmatprep.mubr.msk.f32.mxu1 %vm360_vm0, %v327_v37 }
  0x82   : > { %2187 = vmatmul.mubr.msk.f32.gmra.mxu0 %vm360_vm0, %v264_v38  ;;  %2283 = vmatmul.mubr.msk.f32.gmra.mxu1 %vm360_vm0, %v328_v39 }
  0x83   : > { %2189 = vmatprep.mubr.msk.f32.mxu0 %vm360_vm0, %v265_v40  ;;  %2285 = vmatprep.mubr.msk.f32.mxu1 %vm360_vm0, %v329_v41 }
  0x86   : > { %2190 = vmatmul.mubr.msk.f32.gmra.mxu0 %vm360_vm0, %v266_v42  ;;  %2286 = vmatmul.mubr.msk.f32.gmra.mxu1 %vm360_vm0, %v330_v43 }
  0x87   : > { %2192 = vmatprep.mubr.msk.f32.mxu0 %vm360_vm0, %v267_v44  ;;  %2288 = vmatprep.mubr.msk.f32.mxu1 %vm360_vm0, %v331_v45 }
  0x8a   : > { %2193 = vmatmul.mubr.msk.f32.gmra.mxu0 %vm360_vm0, %v268_v46  ;;  %2289 = vmatmul.mubr.msk.f32.gmra.mxu1 %vm360_vm0, %v332_v47 }
  0x8b   : > { %2195 = vmatprep.mubr.msk.f32.mxu0 %vm360_vm0, %v269_v48  ;;  %2291 = vmatprep.mubr.msk.f32.mxu1 %vm360_vm0, %v333_v49 }
  0x8e   : > { %2196 = vmatmul.mubr.msk.f32.gmra.mxu0 %vm360_vm0, %v270_v50  ;;  %2292 = vmatmul.mubr.msk.f32.gmra.mxu1 %vm360_vm0, %v334_v51 }
  0x8f   : > { %2198 = vmatprep.mubr.msk.f32.mxu0 %vm360_vm0, %v271_v52  ;;  %2294 = vmatprep.mubr.msk.f32.mxu1 %vm360_vm0, %v335_v53 }
  0x92   : > { %2199 = vmatmul.mubr.msk.f32.gmra.mxu0 %vm360_vm0, %v272_v54  ;;  %2295 = vmatmul.mubr.msk.f32.gmra.mxu1 %vm360_vm0, %v336_v55 }
  0x93   : > { %2201 = vmatprep.mubr.msk.f32.mxu0 %vm360_vm0, %v273_v56  ;;  %2297 = vmatprep.mubr.msk.f32.mxu1 %vm360_vm0, %v337_v57 }
  0x96   : > { %2202 = vmatmul.mubr.msk.f32.gmra.mxu0 %vm360_vm0, %v274_v58  ;;  %2298 = vmatmul.mubr.msk.f32.gmra.mxu1 %vm360_vm0, %v338_v59 }
  0x97   : > { %2204 = vmatprep.mubr.msk.f32.mxu0 %vm360_vm0, %v275_v60  ;;  %2300 = vmatprep.mubr.msk.f32.mxu1 %vm360_vm0, %v339_v61 }
  0x9a   : > { %2205 = vmatmul.mubr.msk.f32.gmra.mxu0 %vm360_vm0, %v276_v62  ;;  %2301 = vmatmul.mubr.msk.f32.gmra.mxu1 %vm360_vm0, %v340_v63 }
  0x9b   : > { %2207 = vmatprep.mubr.msk.f32.mxu0 %vm360_vm0, %v277_v0  ;;  %2303 = vmatprep.mubr.msk.f32.mxu1 %vm360_vm0, %v341_v1 }
  0x9e   : > { %2208 = vmatmul.mubr.msk.f32.gmra.mxu0 %vm360_vm0, %v278_v2  ;;  %2304 = vmatmul.mubr.msk.f32.gmra.mxu1 %vm360_vm0, %v342_v3 }
  0x9f   : > { %2210 = vmatprep.mubr.msk.f32.mxu0 %vm360_vm0, %v279_v4  ;;  %2306 = vmatprep.mubr.msk.f32.mxu1 %vm360_vm0, %v343_v5 }
  0xa2   : > { %2211 = vmatmul.mubr.msk.f32.gmra.mxu0 %vm360_vm0, %v280_v6  ;;  %2307 = vmatmul.mubr.msk.f32.gmra.mxu1 %vm360_vm0, %v344_v7 }
  0xe6   : > { %v2119_v9 = vpop.f32.mrf.mxu0  ;;  %v2215_v10 = vpop.f32.mrf.mxu1 }
  0xe7   : > { %v817_v11 = vadd.f32 %v2119_v9, %v2828_v8  ;;  %v1137_v12 = vadd.f32 %v2215_v10, %v2828_v8 }
  0xe8   : > { %v811_v13 = vpop.f32.mrf.mxu0  ;;  %v1131_v14 = vpop.f32.mrf.mxu1 }
  0xe9   : > { %v1451_v15 = vmax.f32 %v817_v11, 0.0  ;;  %v1515_v16 = vmax.f32 %v1137_v12, 0.0  ;;  %v812_v17 = vadd.f32 %v2828_v8, %v811_v13  ;;  %v1132_v18 = vadd.f32 %v2828_v8, %v1131_v14 }
  0xea   : > { %v2122_v19 = vpop.f32.mrf.mxu0  ;;  %v2218_v20 = vpop.f32.mrf.mxu1 }
  0xeb   : > { %1579 = vst [vmem:[%s2836_s7 + $0x8] sm:$0xff] %v1451_v15  ;;  %1643 = vst [vmem:[%s2836_s7 + $0x208] sm:$0xff] %v1515_v16  ;;  %v1450_v21 = vmax.f32 %v812_v17, 0.0  ;;  %v1514_v22 = vmax.f32 %v1132_v18, 0.0  ;;  %v827_v23 = vadd.f32 %v2122_v19, %v2828_v8  ;;  %v1147_v24 = vadd.f32 %v2218_v20, %v2828_v8 }
  0xec   : > { %v821_v25 = vpop.f32.mrf.mxu0  ;;  %v1141_v26 = vpop.f32.mrf.mxu1 }
  0xed   : > { %1578 = vst [vmem:[%s2836_s7] sm:$0xff] %v1450_v21  ;;  %1642 = vst [vmem:[%s2836_s7 + $0x200] sm:$0xff] %v1514_v22  ;;  %v1453_v27 = vmax.f32 %v827_v23, 0.0  ;;  %v1517_v28 = vmax.f32 %v1147_v24, 0.0  ;;  %v822_v29 = vadd.f32 %v2828_v8, %v821_v25  ;;  %v1142_v30 = vadd.f32 %v2828_v8, %v1141_v26 }
  0xee   : > { %v2125_v31 = vpop.f32.mrf.mxu0  ;;  %v2221_v32 = vpop.f32.mrf.mxu1 }
  0xef   : > { %1581 = vst [vmem:[%s2836_s7 + $0x18] sm:$0xff] %v1453_v27  ;;  %1645 = vst [vmem:[%s2836_s7 + $0x218] sm:$0xff] %v1517_v28  ;;  %v1452_v33 = vmax.f32 %v822_v29, 0.0  ;;  %v1516_v34 = vmax.f32 %v1142_v30, 0.0  ;;  %v837_v35 = vadd.f32 %v2125_v31, %v2828_v8  ;;  %v1157_v36 = vadd.f32 %v2221_v32, %v2828_v8 }
  0xf0   : > { %v831_v37 = vpop.f32.mrf.mxu0  ;;  %v1151_v38 = vpop.f32.mrf.mxu1 }
  0xf1   : > { %1580 = vst [vmem:[%s2836_s7 + $0x10] sm:$0xff] %v1452_v33  ;;  %1644 = vst [vmem:[%s2836_s7 + $0x210] sm:$0xff] %v1516_v34  ;;  %v1455_v39 = vmax.f32 %v837_v35, 0.0  ;;  %v1519_v40 = vmax.f32 %v1157_v36, 0.0  ;;  %v832_v41 = vadd.f32 %v2828_v8, %v831_v37  ;;  %v1152_v42 = vadd.f32 %v2828_v8, %v1151_v38 }
  0xf2   : > { %v2128_v43 = vpop.f32.mrf.mxu0  ;;  %v2224_v44 = vpop.f32.mrf.mxu1 }
  0xf3   : > { %1583 = vst [vmem:[%s2836_s7 + $0x28] sm:$0xff] %v1455_v39  ;;  %1647 = vst [vmem:[%s2836_s7 + $0x228] sm:$0xff] %v1519_v40  ;;  %v1454_v45 = vmax.f32 %v832_v41, 0.0  ;;  %v1518_v46 = vmax.f32 %v1152_v42, 0.0  ;;  %v847_v47 = vadd.f32 %v2128_v43, %v2828_v8  ;;  %v1167_v48 = vadd.f32 %v2224_v44, %v2828_v8 }
  0xf4   : > { %v841_v49 = vpop.f32.mrf.mxu0  ;;  %v1161_v50 = vpop.f32.mrf.mxu1 }
  0xf5   : > { %1582 = vst [vmem:[%s2836_s7 + $0x20] sm:$0xff] %v1454_v45  ;;  %1646 = vst [vmem:[%s2836_s7 + $0x220] sm:$0xff] %v1518_v46  ;;  %v1457_v51 = vmax.f32 %v847_v47, 0.0  ;;  %v1521_v52 = vmax.f32 %v1167_v48, 0.0  ;;  %v842_v53 = vadd.f32 %v2828_v8, %v841_v49  ;;  %v1162_v54 = vadd.f32 %v2828_v8, %v1161_v50 }
  0xf6   : > { %v2131_v55 = vpop.f32.mrf.mxu0  ;;  %v2227_v56 = vpop.f32.mrf.mxu1 }
  0xf7   : > { %1585 = vst [vmem:[%s2836_s7 + $0x38] sm:$0xff] %v1457_v51  ;;  %1649 = vst [vmem:[%s2836_s7 + $0x238] sm:$0xff] %v1521_v52  ;;  %v1456_v57 = vmax.f32 %v842_v53, 0.0  ;;  %v1520_v58 = vmax.f32 %v1162_v54, 0.0  ;;  %v857_v59 = vadd.f32 %v2131_v55, %v2828_v8  ;;  %v1177_v60 = vadd.f32 %v2227_v56, %v2828_v8 }
  0xf8   : > { %v851_v61 = vpop.f32.mrf.mxu0  ;;  %v1171_v62 = vpop.f32.mrf.mxu1 }
  0xf9   : > { %1584 = vst [vmem:[%s2836_s7 + $0x30] sm:$0xff] %v1456_v57  ;;  %1648 = vst [vmem:[%s2836_s7 + $0x230] sm:$0xff] %v1520_v58  ;;  %v1459_v63 = vmax.f32 %v857_v59, 0.0  ;;  %v1523_v0 = vmax.f32 %v1177_v60, 0.0  ;;  %v852_v1 = vadd.f32 %v2828_v8, %v851_v61  ;;  %v1172_v2 = vadd.f32 %v2828_v8, %v1171_v62 }
  0xfa   : > { %v2134_v3 = vpop.f32.mrf.mxu0  ;;  %v2230_v4 = vpop.f32.mrf.mxu1 }
  0xfb   : > { %1587 = vst [vmem:[%s2836_s7 + $0x48] sm:$0xff] %v1459_v63  ;;  %1651 = vst [vmem:[%s2836_s7 + $0x248] sm:$0xff] %v1523_v0  ;;  %v1458_v5 = vmax.f32 %v852_v1, 0.0  ;;  %v1522_v6 = vmax.f32 %v1172_v2, 0.0  ;;  %v867_v7 = vadd.f32 %v2134_v3, %v2828_v8  ;;  %v1187_v9 = vadd.f32 %v2230_v4, %v2828_v8 }
  0xfc   : > { %v861_v10 = vpop.f32.mrf.mxu0  ;;  %v1181_v11 = vpop.f32.mrf.mxu1 }
  0xfd   : > { %1586 = vst [vmem:[%s2836_s7 + $0x40] sm:$0xff] %v1458_v5  ;;  %1650 = vst [vmem:[%s2836_s7 + $0x240] sm:$0xff] %v1522_v6  ;;  %v1461_v12 = vmax.f32 %v867_v7, 0.0  ;;  %v1525_v13 = vmax.f32 %v1187_v9, 0.0  ;;  %v862_v14 = vadd.f32 %v2828_v8, %v861_v10  ;;  %v1182_v15 = vadd.f32 %v2828_v8, %v1181_v11 }
  0xfe   : > { %v2137_v16 = vpop.f32.mrf.mxu0  ;;  %v2233_v17 = vpop.f32.mrf.mxu1 }
  0xff   : > { %1589 = vst [vmem:[%s2836_s7 + $0x58] sm:$0xff] %v1461_v12  ;;  %1653 = vst [vmem:[%s2836_s7 + $0x258] sm:$0xff] %v1525_v13  ;;  %v1460_v18 = vmax.f32 %v862_v14, 0.0  ;;  %v1524_v19 = vmax.f32 %v1182_v15, 0.0  ;;  %v877_v20 = vadd.f32 %v2137_v16, %v2828_v8  ;;  %v1197_v21 = vadd.f32 %v2233_v17, %v2828_v8 }
 0x100   : > { %v871_v22 = vpop.f32.mrf.mxu0  ;;  %v1191_v23 = vpop.f32.mrf.mxu1 }
 0x101   : > { %1588 = vst [vmem:[%s2836_s7 + $0x50] sm:$0xff] %v1460_v18  ;;  %1652 = vst [vmem:[%s2836_s7 + $0x250] sm:$0xff] %v1524_v19  ;;  %v1463_v24 = vmax.f32 %v877_v20, 0.0  ;;  %v1527_v25 = vmax.f32 %v1197_v21, 0.0  ;;  %v872_v26 = vadd.f32 %v2828_v8, %v871_v22  ;;  %v1192_v27 = vadd.f32 %v2828_v8, %v1191_v23 }
 0x102   : > { %v2140_v28 = vpop.f32.mrf.mxu0  ;;  %v2236_v29 = vpop.f32.mrf.mxu1 }
 0x103   : > { %1591 = vst [vmem:[%s2836_s7 + $0x68] sm:$0xff] %v1463_v24  ;;  %1655 = vst [vmem:[%s2836_s7 + $0x268] sm:$0xff] %v1527_v25  ;;  %v1462_v30 = vmax.f32 %v872_v26, 0.0  ;;  %v1526_v31 = vmax.f32 %v1192_v27, 0.0  ;;  %v887_v32 = vadd.f32 %v2140_v28, %v2828_v8  ;;  %v1207_v33 = vadd.f32 %v2236_v29, %v2828_v8 }
 0x104   : > { %v881_v34 = vpop.f32.mrf.mxu0  ;;  %v1201_v35 = vpop.f32.mrf.mxu1 }
 0x105   : > { %1590 = vst [vmem:[%s2836_s7 + $0x60] sm:$0xff] %v1462_v30  ;;  %1654 = vst [vmem:[%s2836_s7 + $0x260] sm:$0xff] %v1526_v31  ;;  %v1465_v36 = vmax.f32 %v887_v32, 0.0  ;;  %v1529_v37 = vmax.f32 %v1207_v33, 0.0  ;;  %v882_v38 = vadd.f32 %v2828_v8, %v881_v34  ;;  %v1202_v39 = vadd.f32 %v2828_v8, %v1201_v35 }
 0x106   : > { %v2143_v40 = vpop.f32.mrf.mxu0  ;;  %v2239_v41 = vpop.f32.mrf.mxu1 }
 0x107   : > { %1593 = vst [vmem:[%s2836_s7 + $0x78] sm:$0xff] %v1465_v36  ;;  %1657 = vst [vmem:[%s2836_s7 + $0x278] sm:$0xff] %v1529_v37  ;;  %v1464_v42 = vmax.f32 %v882_v38, 0.0  ;;  %v1528_v43 = vmax.f32 %v1202_v39, 0.0  ;;  %v897_v44 = vadd.f32 %v2143_v40, %v2828_v8  ;;  %v1217_v45 = vadd.f32 %v2239_v41, %v2828_v8 }
 0x108   : > { %v891_v46 = vpop.f32.mrf.mxu0  ;;  %v1211_v47 = vpop.f32.mrf.mxu1 }
 0x109   : > { %1592 = vst [vmem:[%s2836_s7 + $0x70] sm:$0xff] %v1464_v42  ;;  %1656 = vst [vmem:[%s2836_s7 + $0x270] sm:$0xff] %v1528_v43  ;;  %v1467_v48 = vmax.f32 %v897_v44, 0.0  ;;  %v1531_v49 = vmax.f32 %v1217_v45, 0.0  ;;  %v892_v50 = vadd.f32 %v2828_v8, %v891_v46  ;;  %v1212_v51 = vadd.f32 %v2828_v8, %v1211_v47 }
 0x10a   : > { %v2146_v52 = vpop.f32.mrf.mxu0  ;;  %v2242_v53 = vpop.f32.mrf.mxu1 }
 0x10b   : > { %1595 = vst [vmem:[%s2836_s7 + $0x88] sm:$0xff] %v1467_v48  ;;  %1659 = vst [vmem:[%s2836_s7 + $0x288] sm:$0xff] %v1531_v49  ;;  %v1466_v54 = vmax.f32 %v892_v50, 0.0  ;;  %v1530_v55 = vmax.f32 %v1212_v51, 0.0  ;;  %v907_v56 = vadd.f32 %v2146_v52, %v2828_v8  ;;  %v1227_v57 = vadd.f32 %v2242_v53, %v2828_v8 }
 0x10c   : > { %v901_v58 = vpop.f32.mrf.mxu0  ;;  %v1221_v59 = vpop.f32.mrf.mxu1 }
 0x10d   : > { %1594 = vst [vmem:[%s2836_s7 + $0x80] sm:$0xff] %v1466_v54  ;;  %1658 = vst [vmem:[%s2836_s7 + $0x280] sm:$0xff] %v1530_v55  ;;  %v1469_v60 = vmax.f32 %v907_v56, 0.0  ;;  %v1533_v61 = vmax.f32 %v1227_v57, 0.0  ;;  %v902_v62 = vadd.f32 %v2828_v8, %v901_v58  ;;  %v1222_v63 = vadd.f32 %v2828_v8, %v1221_v59 }
 0x10e   : > { %v2149_v0 = vpop.f32.mrf.mxu0  ;;  %v2245_v1 = vpop.f32.mrf.mxu1 }
 0x10f   : > { %1597 = vst [vmem:[%s2836_s7 + $0x98] sm:$0xff] %v1469_v60  ;;  %1661 = vst [vmem:[%s2836_s7 + $0x298] sm:$0xff] %v1533_v61  ;;  %v1468_v2 = vmax.f32 %v902_v62, 0.0  ;;  %v1532_v3 = vmax.f32 %v1222_v63, 0.0  ;;  %v917_v4 = vadd.f32 %v2149_v0, %v2828_v8  ;;  %v1237_v5 = vadd.f32 %v2245_v1, %v2828_v8 }
 0x110   : > { %v911_v6 = vpop.f32.mrf.mxu0  ;;  %v1231_v7 = vpop.f32.mrf.mxu1 }
 0x111   : > { %1596 = vst [vmem:[%s2836_s7 + $0x90] sm:$0xff] %v1468_v2  ;;  %1660 = vst [vmem:[%s2836_s7 + $0x290] sm:$0xff] %v1532_v3  ;;  %v1471_v9 = vmax.f32 %v917_v4, 0.0  ;;  %v1535_v10 = vmax.f32 %v1237_v5, 0.0  ;;  %v912_v11 = vadd.f32 %v2828_v8, %v911_v6  ;;  %v1232_v12 = vadd.f32 %v2828_v8, %v1231_v7 }
 0x112   : > { %v2152_v13 = vpop.f32.mrf.mxu0  ;;  %v2248_v14 = vpop.f32.mrf.mxu1 }
 0x113   : > { %1599 = vst [vmem:[%s2836_s7 + $0xa8] sm:$0xff] %v1471_v9  ;;  %1663 = vst [vmem:[%s2836_s7 + $0x2a8] sm:$0xff] %v1535_v10  ;;  %v1470_v15 = vmax.f32 %v912_v11, 0.0  ;;  %v1534_v16 = vmax.f32 %v1232_v12, 0.0  ;;  %v927_v17 = vadd.f32 %v2152_v13, %v2828_v8  ;;  %v1247_v18 = vadd.f32 %v2248_v14, %v2828_v8 }
 0x114   : > { %v921_v19 = vpop.f32.mrf.mxu0  ;;  %v1241_v20 = vpop.f32.mrf.mxu1 }
 0x115   : > { %1598 = vst [vmem:[%s2836_s7 + $0xa0] sm:$0xff] %v1470_v15  ;;  %1662 = vst [vmem:[%s2836_s7 + $0x2a0] sm:$0xff] %v1534_v16  ;;  %v1473_v21 = vmax.f32 %v927_v17, 0.0  ;;  %v1537_v22 = vmax.f32 %v1247_v18, 0.0  ;;  %v922_v23 = vadd.f32 %v2828_v8, %v921_v19  ;;  %v1242_v24 = vadd.f32 %v2828_v8, %v1241_v20 }
 0x116   : > { %v2155_v25 = vpop.f32.mrf.mxu0  ;;  %v2251_v26 = vpop.f32.mrf.mxu1 }
 0x117   : > { %1601 = vst [vmem:[%s2836_s7 + $0xb8] sm:$0xff] %v1473_v21  ;;  %1665 = vst [vmem:[%s2836_s7 + $0x2b8] sm:$0xff] %v1537_v22  ;;  %v1472_v27 = vmax.f32 %v922_v23, 0.0  ;;  %v1536_v28 = vmax.f32 %v1242_v24, 0.0  ;;  %v937_v29 = vadd.f32 %v2155_v25, %v2828_v8  ;;  %v1257_v30 = vadd.f32 %v2251_v26, %v2828_v8 }
 0x118   : > { %v931_v31 = vpop.f32.mrf.mxu0  ;;  %v1251_v32 = vpop.f32.mrf.mxu1 }
 0x119   : > { %1600 = vst [vmem:[%s2836_s7 + $0xb0] sm:$0xff] %v1472_v27  ;;  %1664 = vst [vmem:[%s2836_s7 + $0x2b0] sm:$0xff] %v1536_v28  ;;  %v1475_v33 = vmax.f32 %v937_v29, 0.0  ;;  %v1539_v34 = vmax.f32 %v1257_v30, 0.0  ;;  %v932_v35 = vadd.f32 %v2828_v8, %v931_v31  ;;  %v1252_v36 = vadd.f32 %v2828_v8, %v1251_v32 }
 0x11a   : > { %v2158_v37 = vpop.f32.mrf.mxu0  ;;  %v2254_v38 = vpop.f32.mrf.mxu1 }
 0x11b   : > { %1603 = vst [vmem:[%s2836_s7 + $0xc8] sm:$0xff] %v1475_v33  ;;  %1667 = vst [vmem:[%s2836_s7 + $0x2c8] sm:$0xff] %v1539_v34  ;;  %v1474_v39 = vmax.f32 %v932_v35, 0.0  ;;  %v1538_v40 = vmax.f32 %v1252_v36, 0.0  ;;  %v947_v41 = vadd.f32 %v2158_v37, %v2828_v8  ;;  %v1267_v42 = vadd.f32 %v2254_v38, %v2828_v8 }
 0x11c   : > { %v941_v43 = vpop.f32.mrf.mxu0  ;;  %v1261_v44 = vpop.f32.mrf.mxu1 }
 0x11d   : > { %1602 = vst [vmem:[%s2836_s7 + $0xc0] sm:$0xff] %v1474_v39  ;;  %1666 = vst [vmem:[%s2836_s7 + $0x2c0] sm:$0xff] %v1538_v40  ;;  %v1477_v45 = vmax.f32 %v947_v41, 0.0  ;;  %v1541_v46 = vmax.f32 %v1267_v42, 0.0  ;;  %v942_v47 = vadd.f32 %v2828_v8, %v941_v43  ;;  %v1262_v48 = vadd.f32 %v2828_v8, %v1261_v44 }
 0x11e   : > { %v2161_v49 = vpop.f32.mrf.mxu0  ;;  %v2257_v50 = vpop.f32.mrf.mxu1 }
 0x11f   : > { %1605 = vst [vmem:[%s2836_s7 + $0xd8] sm:$0xff] %v1477_v45  ;;  %1669 = vst [vmem:[%s2836_s7 + $0x2d8] sm:$0xff] %v1541_v46  ;;  %v1476_v51 = vmax.f32 %v942_v47, 0.0  ;;  %v1540_v52 = vmax.f32 %v1262_v48, 0.0  ;;  %v957_v53 = vadd.f32 %v2161_v49, %v2828_v8  ;;  %v1277_v54 = vadd.f32 %v2257_v50, %v2828_v8 }
 0x120   : > { %v951_v55 = vpop.f32.mrf.mxu0  ;;  %v1271_v56 = vpop.f32.mrf.mxu1 }
 0x121   : > { %1604 = vst [vmem:[%s2836_s7 + $0xd0] sm:$0xff] %v1476_v51  ;;  %1668 = vst [vmem:[%s2836_s7 + $0x2d0] sm:$0xff] %v1540_v52  ;;  %v1479_v57 = vmax.f32 %v957_v53, 0.0  ;;  %v1543_v58 = vmax.f32 %v1277_v54, 0.0  ;;  %v952_v59 = vadd.f32 %v2828_v8, %v951_v55  ;;  %v1272_v60 = vadd.f32 %v2828_v8, %v1271_v56 }
 0x122   : > { %v2164_v61 = vpop.f32.mrf.mxu0  ;;  %v2260_v62 = vpop.f32.mrf.mxu1 }
 0x123   : > { %1607 = vst [vmem:[%s2836_s7 + $0xe8] sm:$0xff] %v1479_v57  ;;  %1671 = vst [vmem:[%s2836_s7 + $0x2e8] sm:$0xff] %v1543_v58  ;;  %v1478_v63 = vmax.f32 %v952_v59, 0.0  ;;  %v1542_v0 = vmax.f32 %v1272_v60, 0.0  ;;  %v967_v1 = vadd.f32 %v2164_v61, %v2828_v8  ;;  %v1287_v2 = vadd.f32 %v2260_v62, %v2828_v8 }
 0x124   : > { %v961_v3 = vpop.f32.mrf.mxu0  ;;  %v1281_v4 = vpop.f32.mrf.mxu1 }
 0x125   : > { %1606 = vst [vmem:[%s2836_s7 + $0xe0] sm:$0xff] %v1478_v63  ;;  %1670 = vst [vmem:[%s2836_s7 + $0x2e0] sm:$0xff] %v1542_v0  ;;  %v1481_v5 = vmax.f32 %v967_v1, 0.0  ;;  %v1545_v6 = vmax.f32 %v1287_v2, 0.0  ;;  %v962_v7 = vadd.f32 %v2828_v8, %v961_v3  ;;  %v1282_v9 = vadd.f32 %v2828_v8, %v1281_v4 }
 0x126   : > { %v2167_v10 = vpop.f32.mrf.mxu0  ;;  %v2263_v11 = vpop.f32.mrf.mxu1 }
 0x127   : > { %1609 = vst [vmem:[%s2836_s7 + $0xf8] sm:$0xff] %v1481_v5  ;;  %1673 = vst [vmem:[%s2836_s7 + $0x2f8] sm:$0xff] %v1545_v6  ;;  %v1480_v12 = vmax.f32 %v962_v7, 0.0  ;;  %v1544_v13 = vmax.f32 %v1282_v9, 0.0  ;;  %v977_v14 = vadd.f32 %v2167_v10, %v2828_v8  ;;  %v1297_v15 = vadd.f32 %v2263_v11, %v2828_v8 }
 0x128   : > { %v971_v16 = vpop.f32.mrf.mxu0  ;;  %v1291_v17 = vpop.f32.mrf.mxu1 }
 0x129   : > { %1608 = vst [vmem:[%s2836_s7 + $0xf0] sm:$0xff] %v1480_v12  ;;  %1672 = vst [vmem:[%s2836_s7 + $0x2f0] sm:$0xff] %v1544_v13  ;;  %v1483_v18 = vmax.f32 %v977_v14, 0.0  ;;  %v1547_v19 = vmax.f32 %v1297_v15, 0.0  ;;  %v972_v20 = vadd.f32 %v2828_v8, %v971_v16  ;;  %v1292_v21 = vadd.f32 %v2828_v8, %v1291_v17 }
 0x12a   : > { %v2170_v22 = vpop.f32.mrf.mxu0  ;;  %v2266_v23 = vpop.f32.mrf.mxu1 }
 0x12b   : > { %1611 = vst [vmem:[%s2836_s7 + $0x108] sm:$0xff] %v1483_v18  ;;  %1675 = vst [vmem:[%s2836_s7 + $0x308] sm:$0xff] %v1547_v19  ;;  %v1482_v24 = vmax.f32 %v972_v20, 0.0  ;;  %v1546_v25 = vmax.f32 %v1292_v21, 0.0  ;;  %v987_v26 = vadd.f32 %v2170_v22, %v2828_v8  ;;  %v1307_v27 = vadd.f32 %v2266_v23, %v2828_v8 }
 0x12c   : > { %v981_v28 = vpop.f32.mrf.mxu0  ;;  %v1301_v29 = vpop.f32.mrf.mxu1 }
 0x12d   : > { %1610 = vst [vmem:[%s2836_s7 + $0x100] sm:$0xff] %v1482_v24  ;;  %1674 = vst [vmem:[%s2836_s7 + $0x300] sm:$0xff] %v1546_v25  ;;  %v1485_v30 = vmax.f32 %v987_v26, 0.0  ;;  %v1549_v31 = vmax.f32 %v1307_v27, 0.0  ;;  %v982_v32 = vadd.f32 %v2828_v8, %v981_v28  ;;  %v1302_v33 = vadd.f32 %v2828_v8, %v1301_v29 }
 0x12e   : > { %v2173_v34 = vpop.f32.mrf.mxu0  ;;  %v2269_v35 = vpop.f32.mrf.mxu1 }
 0x12f   : > { %1613 = vst [vmem:[%s2836_s7 + $0x118] sm:$0xff] %v1485_v30  ;;  %1677 = vst [vmem:[%s2836_s7 + $0x318] sm:$0xff] %v1549_v31  ;;  %v1484_v36 = vmax.f32 %v982_v32, 0.0  ;;  %v1548_v37 = vmax.f32 %v1302_v33, 0.0  ;;  %v997_v38 = vadd.f32 %v2173_v34, %v2828_v8  ;;  %v1317_v39 = vadd.f32 %v2269_v35, %v2828_v8 }
 0x130   : > { %v991_v40 = vpop.f32.mrf.mxu0  ;;  %v1311_v41 = vpop.f32.mrf.mxu1 }
 0x131   : > { %1612 = vst [vmem:[%s2836_s7 + $0x110] sm:$0xff] %v1484_v36  ;;  %1676 = vst [vmem:[%s2836_s7 + $0x310] sm:$0xff] %v1548_v37  ;;  %v1487_v42 = vmax.f32 %v997_v38, 0.0  ;;  %v1551_v43 = vmax.f32 %v1317_v39, 0.0  ;;  %v992_v44 = vadd.f32 %v2828_v8, %v991_v40  ;;  %v1312_v45 = vadd.f32 %v2828_v8, %v1311_v41 }
 0x132   : > { %v2176_v46 = vpop.f32.mrf.mxu0  ;;  %v2272_v47 = vpop.f32.mrf.mxu1 }
 0x133   : > { %1615 = vst [vmem:[%s2836_s7 + $0x128] sm:$0xff] %v1487_v42  ;;  %1679 = vst [vmem:[%s2836_s7 + $0x328] sm:$0xff] %v1551_v43  ;;  %v1486_v48 = vmax.f32 %v992_v44, 0.0  ;;  %v1550_v49 = vmax.f32 %v1312_v45, 0.0  ;;  %v1007_v50 = vadd.f32 %v2176_v46, %v2828_v8  ;;  %v1327_v51 = vadd.f32 %v2272_v47, %v2828_v8 }
 0x134   : > { %v1001_v52 = vpop.f32.mrf.mxu0  ;;  %v1321_v53 = vpop.f32.mrf.mxu1 }
 0x135   : > { %1614 = vst [vmem:[%s2836_s7 + $0x120] sm:$0xff] %v1486_v48  ;;  %1678 = vst [vmem:[%s2836_s7 + $0x320] sm:$0xff] %v1550_v49  ;;  %v1489_v54 = vmax.f32 %v1007_v50, 0.0  ;;  %v1553_v55 = vmax.f32 %v1327_v51, 0.0  ;;  %v1002_v56 = vadd.f32 %v2828_v8, %v1001_v52  ;;  %v1322_v57 = vadd.f32 %v2828_v8, %v1321_v53 }
 0x136   : > { %v2179_v58 = vpop.f32.mrf.mxu0  ;;  %v2275_v59 = vpop.f32.mrf.mxu1 }
 0x137   : > { %1617 = vst [vmem:[%s2836_s7 + $0x138] sm:$0xff] %v1489_v54  ;;  %1681 = vst [vmem:[%s2836_s7 + $0x338] sm:$0xff] %v1553_v55  ;;  %v1488_v60 = vmax.f32 %v1002_v56, 0.0  ;;  %v1552_v61 = vmax.f32 %v1322_v57, 0.0  ;;  %v1017_v62 = vadd.f32 %v2179_v58, %v2828_v8  ;;  %v1337_v63 = vadd.f32 %v2275_v59, %v2828_v8 }
 0x138   : > { %v1011_v0 = vpop.f32.mrf.mxu0  ;;  %v1331_v1 = vpop.f32.mrf.mxu1 }
 0x139   : > { %1616 = vst [vmem:[%s2836_s7 + $0x130] sm:$0xff] %v1488_v60  ;;  %1680 = vst [vmem:[%s2836_s7 + $0x330] sm:$0xff] %v1552_v61  ;;  %v1491_v2 = vmax.f32 %v1017_v62, 0.0  ;;  %v1555_v3 = vmax.f32 %v1337_v63, 0.0  ;;  %v1012_v4 = vadd.f32 %v2828_v8, %v1011_v0  ;;  %v1332_v5 = vadd.f32 %v2828_v8, %v1331_v1 }
 0x13a   : > { %v2182_v6 = vpop.f32.mrf.mxu0  ;;  %v2278_v7 = vpop.f32.mrf.mxu1 }
 0x13b   : > { %1619 = vst [vmem:[%s2836_s7 + $0x148] sm:$0xff] %v1491_v2  ;;  %1683 = vst [vmem:[%s2836_s7 + $0x348] sm:$0xff] %v1555_v3  ;;  %v1490_v9 = vmax.f32 %v1012_v4, 0.0  ;;  %v1554_v10 = vmax.f32 %v1332_v5, 0.0  ;;  %v1027_v11 = vadd.f32 %v2182_v6, %v2828_v8  ;;  %v1347_v12 = vadd.f32 %v2278_v7, %v2828_v8 }
 0x13c   : > { %v1021_v13 = vpop.f32.mrf.mxu0  ;;  %v1341_v14 = vpop.f32.mrf.mxu1 }
 0x13d   : > { %1618 = vst [vmem:[%s2836_s7 + $0x140] sm:$0xff] %v1490_v9  ;;  %1682 = vst [vmem:[%s2836_s7 + $0x340] sm:$0xff] %v1554_v10  ;;  %v1493_v15 = vmax.f32 %v1027_v11, 0.0  ;;  %v1557_v16 = vmax.f32 %v1347_v12, 0.0  ;;  %v1022_v17 = vadd.f32 %v2828_v8, %v1021_v13  ;;  %v1342_v18 = vadd.f32 %v2828_v8, %v1341_v14 }
 0x13e   : > { %v2185_v19 = vpop.f32.mrf.mxu0  ;;  %v2281_v20 = vpop.f32.mrf.mxu1 }
 0x13f   : > { %1621 = vst [vmem:[%s2836_s7 + $0x158] sm:$0xff] %v1493_v15  ;;  %1685 = vst [vmem:[%s2836_s7 + $0x358] sm:$0xff] %v1557_v16  ;;  %v1492_v21 = vmax.f32 %v1022_v17, 0.0  ;;  %v1556_v22 = vmax.f32 %v1342_v18, 0.0  ;;  %v1037_v23 = vadd.f32 %v2185_v19, %v2828_v8  ;;  %v1357_v24 = vadd.f32 %v2281_v20, %v2828_v8 }
 0x140   : > { %v1031_v25 = vpop.f32.mrf.mxu0  ;;  %v1351_v26 = vpop.f32.mrf.mxu1 }
 0x141   : > { %1620 = vst [vmem:[%s2836_s7 + $0x150] sm:$0xff] %v1492_v21  ;;  %1684 = vst [vmem:[%s2836_s7 + $0x350] sm:$0xff] %v1556_v22  ;;  %v1495_v27 = vmax.f32 %v1037_v23, 0.0  ;;  %v1559_v28 = vmax.f32 %v1357_v24, 0.0  ;;  %v1032_v29 = vadd.f32 %v2828_v8, %v1031_v25  ;;  %v1352_v30 = vadd.f32 %v2828_v8, %v1351_v26 }
 0x142   : > { %v2188_v31 = vpop.f32.mrf.mxu0  ;;  %v2284_v32 = vpop.f32.mrf.mxu1 }
 0x143   : > { %1623 = vst [vmem:[%s2836_s7 + $0x168] sm:$0xff] %v1495_v27  ;;  %1687 = vst [vmem:[%s2836_s7 + $0x368] sm:$0xff] %v1559_v28  ;;  %v1494_v33 = vmax.f32 %v1032_v29, 0.0  ;;  %v1558_v34 = vmax.f32 %v1352_v30, 0.0  ;;  %v1047_v35 = vadd.f32 %v2188_v31, %v2828_v8  ;;  %v1367_v36 = vadd.f32 %v2284_v32, %v2828_v8 }
 0x144   : > { %v1041_v37 = vpop.f32.mrf.mxu0  ;;  %v1361_v38 = vpop.f32.mrf.mxu1 }
 0x145   : > { %1622 = vst [vmem:[%s2836_s7 + $0x160] sm:$0xff] %v1494_v33  ;;  %1686 = vst [vmem:[%s2836_s7 + $0x360] sm:$0xff] %v1558_v34  ;;  %v1497_v39 = vmax.f32 %v1047_v35, 0.0  ;;  %v1561_v40 = vmax.f32 %v1367_v36, 0.0  ;;  %v1042_v41 = vadd.f32 %v2828_v8, %v1041_v37  ;;  %v1362_v42 = vadd.f32 %v2828_v8, %v1361_v38 }
 0x146   : > { %v2191_v43 = vpop.f32.mrf.mxu0  ;;  %v2287_v44 = vpop.f32.mrf.mxu1 }
 0x147   : > { %1625 = vst [vmem:[%s2836_s7 + $0x178] sm:$0xff] %v1497_v39  ;;  %1689 = vst [vmem:[%s2836_s7 + $0x378] sm:$0xff] %v1561_v40  ;;  %v1496_v45 = vmax.f32 %v1042_v41, 0.0  ;;  %v1560_v46 = vmax.f32 %v1362_v42, 0.0  ;;  %v1057_v47 = vadd.f32 %v2191_v43, %v2828_v8  ;;  %v1377_v48 = vadd.f32 %v2287_v44, %v2828_v8 }
 0x148   : > { %v1051_v49 = vpop.f32.mrf.mxu0  ;;  %v1371_v50 = vpop.f32.mrf.mxu1 }
 0x149   : > { %1624 = vst [vmem:[%s2836_s7 + $0x170] sm:$0xff] %v1496_v45  ;;  %1688 = vst [vmem:[%s2836_s7 + $0x370] sm:$0xff] %v1560_v46  ;;  %v1499_v51 = vmax.f32 %v1057_v47, 0.0  ;;  %v1563_v52 = vmax.f32 %v1377_v48, 0.0  ;;  %v1052_v53 = vadd.f32 %v2828_v8, %v1051_v49  ;;  %v1372_v54 = vadd.f32 %v2828_v8, %v1371_v50 }
 0x14a   : > { %v2194_v55 = vpop.f32.mrf.mxu0  ;;  %v2290_v56 = vpop.f32.mrf.mxu1 }
 0x14b   : > { %1627 = vst [vmem:[%s2836_s7 + $0x188] sm:$0xff] %v1499_v51  ;;  %1691 = vst [vmem:[%s2836_s7 + $0x388] sm:$0xff] %v1563_v52  ;;  %v1498_v57 = vmax.f32 %v1052_v53, 0.0  ;;  %v1562_v58 = vmax.f32 %v1372_v54, 0.0  ;;  %v1067_v59 = vadd.f32 %v2194_v55, %v2828_v8  ;;  %v1387_v60 = vadd.f32 %v2290_v56, %v2828_v8 }
 0x14c   : > { %v1061_v61 = vpop.f32.mrf.mxu0  ;;  %v1381_v62 = vpop.f32.mrf.mxu1 }
 0x14d   : > { %1626 = vst [vmem:[%s2836_s7 + $0x180] sm:$0xff] %v1498_v57  ;;  %1690 = vst [vmem:[%s2836_s7 + $0x380] sm:$0xff] %v1562_v58  ;;  %v1501_v63 = vmax.f32 %v1067_v59, 0.0  ;;  %v1565_v0 = vmax.f32 %v1387_v60, 0.0  ;;  %v1062_v1 = vadd.f32 %v2828_v8, %v1061_v61  ;;  %v1382_v2 = vadd.f32 %v2828_v8, %v1381_v62 }
 0x14e   : > { %v2197_v3 = vpop.f32.mrf.mxu0  ;;  %v2293_v4 = vpop.f32.mrf.mxu1 }
 0x14f   : > { %1629 = vst [vmem:[%s2836_s7 + $0x198] sm:$0xff] %v1501_v63  ;;  %1693 = vst [vmem:[%s2836_s7 + $0x398] sm:$0xff] %v1565_v0  ;;  %v1500_v5 = vmax.f32 %v1062_v1, 0.0  ;;  %v1564_v6 = vmax.f32 %v1382_v2, 0.0  ;;  %v1077_v7 = vadd.f32 %v2197_v3, %v2828_v8  ;;  %v1397_v9 = vadd.f32 %v2293_v4, %v2828_v8 }
 0x150   : > { %v1071_v10 = vpop.f32.mrf.mxu0  ;;  %v1391_v11 = vpop.f32.mrf.mxu1 }
 0x151   : > { %1628 = vst [vmem:[%s2836_s7 + $0x190] sm:$0xff] %v1500_v5  ;;  %1692 = vst [vmem:[%s2836_s7 + $0x390] sm:$0xff] %v1564_v6  ;;  %v1503_v12 = vmax.f32 %v1077_v7, 0.0  ;;  %v1567_v13 = vmax.f32 %v1397_v9, 0.0  ;;  %v1072_v14 = vadd.f32 %v2828_v8, %v1071_v10  ;;  %v1392_v15 = vadd.f32 %v2828_v8, %v1391_v11 }
 0x152   : > { %v2200_v16 = vpop.f32.mrf.mxu0  ;;  %v2296_v17 = vpop.f32.mrf.mxu1 }
 0x153   : > { %1631 = vst [vmem:[%s2836_s7 + $0x1a8] sm:$0xff] %v1503_v12  ;;  %1695 = vst [vmem:[%s2836_s7 + $0x3a8] sm:$0xff] %v1567_v13  ;;  %v1502_v18 = vmax.f32 %v1072_v14, 0.0  ;;  %v1566_v19 = vmax.f32 %v1392_v15, 0.0  ;;  %v1087_v20 = vadd.f32 %v2200_v16, %v2828_v8  ;;  %v1407_v21 = vadd.f32 %v2296_v17, %v2828_v8 }
 0x154   : > { %v1081_v22 = vpop.f32.mrf.mxu0  ;;  %v1401_v23 = vpop.f32.mrf.mxu1 }
 0x155   : > { %1630 = vst [vmem:[%s2836_s7 + $0x1a0] sm:$0xff] %v1502_v18  ;;  %1694 = vst [vmem:[%s2836_s7 + $0x3a0] sm:$0xff] %v1566_v19  ;;  %v1505_v24 = vmax.f32 %v1087_v20, 0.0  ;;  %v1569_v25 = vmax.f32 %v1407_v21, 0.0  ;;  %v1082_v26 = vadd.f32 %v2828_v8, %v1081_v22  ;;  %v1402_v27 = vadd.f32 %v2828_v8, %v1401_v23 }
 0x156   : > { %v2203_v28 = vpop.f32.mrf.mxu0  ;;  %v2299_v29 = vpop.f32.mrf.mxu1 }
 0x157   : > { %1633 = vst [vmem:[%s2836_s7 + $0x1b8] sm:$0xff] %v1505_v24  ;;  %1697 = vst [vmem:[%s2836_s7 + $0x3b8] sm:$0xff] %v1569_v25  ;;  %v1504_v30 = vmax.f32 %v1082_v26, 0.0  ;;  %v1568_v31 = vmax.f32 %v1402_v27, 0.0  ;;  %v1097_v32 = vadd.f32 %v2203_v28, %v2828_v8  ;;  %v1417_v33 = vadd.f32 %v2299_v29, %v2828_v8 }
 0x158   : > { %v1091_v34 = vpop.f32.mrf.mxu0  ;;  %v1411_v35 = vpop.f32.mrf.mxu1 }
 0x159   : > { %1632 = vst [vmem:[%s2836_s7 + $0x1b0] sm:$0xff] %v1504_v30  ;;  %1696 = vst [vmem:[%s2836_s7 + $0x3b0] sm:$0xff] %v1568_v31  ;;  %v1507_v36 = vmax.f32 %v1097_v32, 0.0  ;;  %v1571_v37 = vmax.f32 %v1417_v33, 0.0  ;;  %v1092_v38 = vadd.f32 %v2828_v8, %v1091_v34  ;;  %v1412_v39 = vadd.f32 %v2828_v8, %v1411_v35 }
 0x15a   : > { %v2206_v40 = vpop.f32.mrf.mxu0  ;;  %v2302_v41 = vpop.f32.mrf.mxu1 }
 0x15b   : > { %1635 = vst [vmem:[%s2836_s7 + $0x1c8] sm:$0xff] %v1507_v36  ;;  %1699 = vst [vmem:[%s2836_s7 + $0x3c8] sm:$0xff] %v1571_v37  ;;  %v1506_v42 = vmax.f32 %v1092_v38, 0.0  ;;  %v1570_v43 = vmax.f32 %v1412_v39, 0.0  ;;  %v1107_v44 = vadd.f32 %v2206_v40, %v2828_v8  ;;  %v1427_v45 = vadd.f32 %v2302_v41, %v2828_v8 }
 0x15c   : > { %v1101_v46 = vpop.f32.mrf.mxu0  ;;  %v1421_v47 = vpop.f32.mrf.mxu1 }
 0x15d   : > { %1634 = vst [vmem:[%s2836_s7 + $0x1c0] sm:$0xff] %v1506_v42  ;;  %1698 = vst [vmem:[%s2836_s7 + $0x3c0] sm:$0xff] %v1570_v43  ;;  %v1509_v48 = vmax.f32 %v1107_v44, 0.0  ;;  %v1573_v49 = vmax.f32 %v1427_v45, 0.0  ;;  %v1102_v50 = vadd.f32 %v2828_v8, %v1101_v46  ;;  %v1422_v51 = vadd.f32 %v2828_v8, %v1421_v47 }
 0x15e   : > { %v2209_v52 = vpop.f32.mrf.mxu0  ;;  %v2305_v53 = vpop.f32.mrf.mxu1 }
 0x15f   : > { %1637 = vst [vmem:[%s2836_s7 + $0x1d8] sm:$0xff] %v1509_v48  ;;  %1701 = vst [vmem:[%s2836_s7 + $0x3d8] sm:$0xff] %v1573_v49  ;;  %v1508_v54 = vmax.f32 %v1102_v50, 0.0  ;;  %v1572_v55 = vmax.f32 %v1422_v51, 0.0  ;;  %v1117_v56 = vadd.f32 %v2209_v52, %v2828_v8  ;;  %v1437_v57 = vadd.f32 %v2305_v53, %v2828_v8 }
 0x160   : > { %v1111_v58 = vpop.f32.mrf.mxu0  ;;  %v1431_v59 = vpop.f32.mrf.mxu1 }
 0x161   : > { %1636 = vst [vmem:[%s2836_s7 + $0x1d0] sm:$0xff] %v1508_v54  ;;  %1700 = vst [vmem:[%s2836_s7 + $0x3d0] sm:$0xff] %v1572_v55  ;;  %v1511_v60 = vmax.f32 %v1117_v56, 0.0  ;;  %v1575_v61 = vmax.f32 %v1437_v57, 0.0  ;;  %v1112_v62 = vadd.f32 %v2828_v8, %v1111_v58  ;;  %v1432_v63 = vadd.f32 %v2828_v8, %v1431_v59 }
 0x162   : > { %v2212_v0 = vpop.f32.mrf.mxu0  ;;  %v2308_v1 = vpop.f32.mrf.mxu1 }
 0x163   : > { %1639 = vst [vmem:[%s2836_s7 + $0x1e8] sm:$0xff] %v1511_v60  ;;  %1703 = vst [vmem:[%s2836_s7 + $0x3e8] sm:$0xff] %v1575_v61  ;;  %v1510_v2 = vmax.f32 %v1112_v62, 0.0  ;;  %v1574_v3 = vmax.f32 %v1432_v63, 0.0  ;;  %v1127_v4 = vadd.f32 %v2212_v0, %v2828_v8  ;;  %v1447_v5 = vadd.f32 %v2308_v1, %v2828_v8 }
 0x164   : > { %v1121_v6 = vpop.f32.mrf.mxu0  ;;  %v1441_v7 = vpop.f32.mrf.mxu1 }
 0x165   : > { %1638 = vst [vmem:[%s2836_s7 + $0x1e0] sm:$0xff] %v1510_v2  ;;  %1702 = vst [vmem:[%s2836_s7 + $0x3e0] sm:$0xff] %v1574_v3  ;;  %v1513_v9 = vmax.f32 %v1127_v4, 0.0  ;;  %v1577_v10 = vmax.f32 %v1447_v5, 0.0  ;;  %v1122_v11 = vadd.f32 %v2828_v8, %v1121_v6  ;;  %v1442_v12 = vadd.f32 %v2828_v8, %v1441_v7 }
 0x167   : > { %1641 = vst [vmem:[%s2836_s7 + $0x1f8] sm:$0xff] %v1513_v9  ;;  %1705 = vst [vmem:[%s2836_s7 + $0x3f8] sm:$0xff] %v1577_v10  ;;  %v1512_v13 = vmax.f32 %v1122_v11, 0.0  ;;  %v1576_v14 = vmax.f32 %v1442_v12, 0.0 }
 0x169   : > { %1640 = vst [vmem:[%s2836_s7 + $0x1f0] sm:$0xff] %v1512_v13  ;;  %1704 = vst [vmem:[%s2836_s7 + $0x3f0] sm:$0xff] %v1576_v14 }
 0x16a   : > { %2395 = shalt.err (!%p2392_p5)
}
 0x16b   : > { %s2396_s27 = scalar_lea.hbm %s3091_s18, 16384  ;;  %s2400_s30 = scalar_lea.hbm %s3149_s3, 32768 }
 0x16c   : > { %p2397_p6 = scmp.ne.s32.totalorder %s3091_s18, %s2396_s27  ;;  %p2401_p10 = scmp.lt.s32.totalorder %s3091_s18, %s3149_s3 }
 0x16d   : > { %p2402_p11 = scmp.lt.s32.totalorder %s2400_s30, %s2396_s27 }
 0x16e   : > { %p2398_p7 = pnand %p2397_p6, %p2523_p4 }
 0x16f   : > { %p2403_p12 = por %p2402_p11, %p2401_p10 }
 0x170   : > { %p2399_p9 = pneg %p2398_p7 }
 0x172   : > { %p2404_p13 = pnand %p2403_p12, %p2399_p9 }
 0x174   : > { %2407 = shalt.err (!%p2404_p13)
}
 0x175   : > { %s2461_s6 = smov 128   ;;  %s2462_s7 = smov 8  }
 0x176   : > { %2325 = dma.vmem_to_hbm [thread:$0]  (%p2523_p4), %s3093_s9, 16384, %s3091_s18, %s3101_s15, %s2461_s6, %s2461_s6, %s2462_s7  }
 0x177 PF: > { %p2331_p0 = scmp.ge.s32.totalorder %s2458_s17, 2  ;;  %s1736_s8 = sand.u32 1, %s2438_s12  }
 0x178   : > { %s1737_s10 = scalar_lea.sflag [#allocation3], %s1736_s8 }
 0x179   : > { %p2328_p1 = pnand %p2331_p0, %p2530_p8 }
 0x17b   : > { %p2329_p2 = pneg %p2328_p1 }
 0x17d   : > { %2433 = dma.done.wait (%p2329_p2), %s1737_s10, 16384  }
 0x17e   : > { %2435 = vsyncadd (%p2329_p2), %s1737_s10, 4294950912  ;;  %s16_s17 = sadd.s32 1, %s2458_s17   ;;  %s3152_s12 = smov %s2442_s13 }
 0x17f   : > { %p13_p3 = scmp.ge.s32.totalorder %s16_s17, 4   ;;  %s3153_s13 = smov %s2446_s14 }
 0x180   : > { %s3154_s14 = smov %s2536_s25  ;;  %s3155_s15 = smov %s2454_s16 }
 0x181   : > { %s3156_s16 = smov %s3158_s20  ;;  %15 = sbr.rel (!%p13_p3) target bundleno = 4 (0x4), region = 73 }
 0x186   :  { %1742 = vsyncpa [#allocation3], 1 }
 0x187   :  { %1744 = vsyncpa [#allocation3 + $0x1], 1 }

// kernel: tpu_custom_call.1
= control target key start
LH: loop header
LB: loop body
LE: loop exit
PB: predicated region body
PF: predicated region fallthrough
CT: control target
= control target key end

     0   :  { %8 = vsyncpa [#allocation3], 0  ;;  %s3146_s0 = inlined_call_operand.vmem [shape: f32[2048,64], index: 0, kind: input, shape index: {}]   ;;  %s3147_s1 = inlined_call_operand.vmem [shape: f32[64,128], index: 1, kind: input, shape index: {}]   ;;  %s3148_s2 = inlined_call_operand.vmem [shape: f32[1,128], index: 2, kind: input, shape index: {}]   ;;  %s3149_s3 = inlined_call_operand.hbm [shape: f32[2048,128], index: 3, kind: output, shape index: {}]  }
   0x1   :  { %10 = vsyncpa [#allocation3 + $0x1], 0  ;;  %s2483_s12 = smov 0   ;;  %s2485_s13 = smov 0  }
   0x2   :  { %s2487_s14 = smov 0   ;;  %s2489_s15 = smov 0  }
   0x3   :  { %s2491_s16 = smov 0   ;;  %s2493_s17 = smov 0  }
   0x4 LB: > { %s1820_s18 = sadd.s32 4294967295, %s2458_s17   ;;  %s1821_s19 = sadd.s32 4294967294, %s2458_s17   ;;  %s2458_s17 = sphi %s2493_s17, %s16_s17   ;;  %s2454_s16 = sphi %s2491_s16, %s3156_s16   ;;  %s2450_s15 = sphi %s2489_s15, %s3155_s15   ;;  %s2446_s14 = sphi %s2487_s14, %s3154_s14   ;;  %s2442_s13 = sphi %s2485_s13, %s3153_s13   ;;  %s2438_s12 = sphi %s2483_s12, %s3152_s12  }
   0x5   : > { %s28_s20 = sadd.s32 1, %s2454_s16  ;;  %s115_s21 = sadd.s32 1, %s2446_s14 }
   0x6   : > { %p30_p0 = scmp.ge.s32.totalorder %s28_s20, 2  ;;  %p125_p1 = scmp.ne.s32.totalorder %s2446_s14, %s2442_s13 }
   0x7   : > { %p126_p2 = scmp.eq.s32.totalorder %s1820_s18, 1  ;;  %p131_p3 = scmp.ne.s32.totalorder %s2442_s13, %s2438_s12 }
   0x8   : > { %s3158_s20 = smov (%p30_p0, %s28_s20), 0  ;;  %p132_p5 = scmp.eq.s32.totalorder %s1821_s19, 1 }
   0x9   : > { %p2523_p4 = por %p126_p2, %p125_p1  ;;  %s110_s23 = ssub.s32 %s2454_s16, %s3158_s20 }
   0xa   : > { %p1826_p6 = scmp.ge.s32.totalorder %s2458_s17, 1  ;;  %p113_p7 = scmp.eq.s32.totalorder %s110_s23, 0 }
   0xb   : > { %p2530_p8 = por %p132_p5, %p131_p3  ;;  %p172_p9 = scmp.lt.s32.totalorder %s2458_s17, 3 }
   0xc   : > { %s2536_s25 = scalar_select %p113_p7, %s2446_s14, %s115_s21  }
   0xd   : > { %p173_p10 = pnand %p1826_p6, %p172_p9 }
   0xe   : > { %s1828_s30 = sshll.u32 (!%p173_p10), %s2450_s15, 7  ;;  %s1964_s8 = sshll.u32 (!%p173_p10), %s2450_s15, 14 }
   0xf   : > { %176 = sbr.rel (%p173_p10) target bundleno = 375 (0x177), region = 32  ;;  %p204_p11 = scmp.lt.s32.totalorder (!%p173_p10), %s1828_s30, 255 }
  0x10   : > { %s2460_s21 = smov (!%p173_p10), [#allocation2]  }
  0x11   : > { %s2386_s23 = sshll.u32 (!%p173_p10), %s2460_s21, 4  ;;  %s2387_s23 = int_to_ptr.vmem [resolvable:$false] %s2386_s23 }
  0x12   : > { %s2388_s26 = scalar_lea.vmem (!%p173_p10), %s2387_s23, 32768 }
  0x14   : > { %v352_v0 = vld [vmem:[%s3147_s1 + $0x38] sm:$0xff]  ;;  %v351_v1 = vld [vmem:[%s3147_s1 + $0x30] sm:$0xff]  ;;  %v350_v2 = vld [vmem:[%s3147_s1 + $0x28] sm:$0xff]  ;;  %s3160_s30 = smov (!%p204_p11, %s1828_s30), 255  ;;  %vm360_vm0 = vcmask 523264  }
  0x15   : > { %2101 = vmatprep.subr.mxu0 %v352_v0  ;;  %2309 = vmatprep.subr.mxu1 %v352_v0  ;;  %v349_v3 = vld [vmem:[%s3147_s1 + $0x20] sm:$0xff]  ;;  %v348_v4 = vld [vmem:[%s3147_s1 + $0x18] sm:$0xff]  ;;  %v347_v5 = vld [vmem:[%s3147_s1 + $0x10] sm:$0xff]  ;;  %s1829_s18 = sshll.u32 %s3160_s30, 3  ;;  %s200_s30 = sand.u32 1, %s2442_s13  }
  0x16   : > { %2102 = vmatpush3.msra.mxu0 %v352_v0  ;;  %2317 = vmatpush3.msra.mxu1 %v352_v0  ;;  %v346_v6 = vld [vmem:[%s3147_s1 + $0x8] sm:$0xff]  ;;  %s2563_s27 = scalar_lea.vmem %s3146_s0, %s1829_s18  ;;  %v345_v7 = vld [vmem:[%s3147_s1] sm:$0xff]  ;;  %s1827_s6 = sshll.u32 %s200_s30, 10 }
  0x17   : > { %2103 = vmatprep.subr.mxu0 %v351_v1  ;;  %2310 = vmatprep.subr.mxu1 %v351_v1  ;;  %v217_v8 = vld [vmem:[%s2563_s27] sm:$0xff]  ;;  %v218_v10 = vld [vmem:[%s2563_s27 + $0x8] sm:$0xff]  ;;  %v219_v12 = vld [vmem:[%s2563_s27 + $0x10] sm:$0xff]  ;;  %s2836_s7 = scalar_lea.vmem [#allocation2], %s1827_s6  ;;  %s3091_s18 = scalar_lea.hbm %s3149_s3, %s1964_s8 }
  0x18   : > { %2104 = vmatpush3.msra.mxu0 %v351_v1  ;;  %2318 = vmatpush3.msra.mxu1 %v351_v1  ;;  %v281_v9 = vld [vmem:[%s2563_s27 + $0x200] sm:$0xff]  ;;  %v282_v11 = vld [vmem:[%s2563_s27 + $0x208] sm:$0xff]  ;;  %v283_v13 = vld [vmem:[%s2563_s27 + $0x210] sm:$0xff]  ;;  %s1721_s9 = sshll.u32 %s2836_s7, 4  ;;  %s3101_s15 = scalar_lea.sflag [#allocation3], %s200_s30  ;;  %s3093_s9 = int_to_ptr.vmem [resolvable:$true] %s1721_s9 }
  0x19   : > { %2105 = vmatprep.subr.mxu0 %v350_v2  ;;  %2311 = vmatprep.subr.mxu1 %v350_v2  ;;  %v220_v14 = vld [vmem:[%s2563_s27 + $0x18] sm:$0xff]  ;;  %v221_v16 = vld [vmem:[%s2563_s27 + $0x20] sm:$0xff]  ;;  %v222_v18 = vld [vmem:[%s2563_s27 + $0x28] sm:$0xff]  ;;  %s2382_s19 = scalar_lea.vmem %s3093_s9, 16384  ;;  %p2389_p1 = scmp.lt.s32.totalorder %s3093_s9, %s2387_s23 }
  0x1a   : > { %2106 = vmatpush3.msra.mxu0 %v350_v2  ;;  %2319 = vmatpush3.msra.mxu1 %v350_v2  ;;  %v284_v15 = vld [vmem:[%s2563_s27 + $0x218] sm:$0xff]  ;;  %v285_v17 = vld [vmem:[%s2563_s27 + $0x220] sm:$0xff]  ;;  %v286_v19 = vld [vmem:[%s2563_s27 + $0x228] sm:$0xff]  ;;  %p2383_p12 = scmp.ne.s32.totalorder %s3093_s9, %s2382_s19  ;;  %p2390_p2 = scmp.lt.s32.totalorder %s2388_s26, %s2382_s19 }
  0x1b   : > { %2107 = vmatprep.subr.mxu0 %v349_v3  ;;  %2312 = vmatprep.subr.mxu1 %v349_v3  ;;  %v223_v20 = vld [vmem:[%s2563_s27 + $0x30] sm:$0xff]  ;;  %v224_v22 = vld [vmem:[%s2563_s27 + $0x38] sm:$0xff]  ;;  %v225_v24 = vld [vmem:[%s2563_s27 + $0x40] sm:$0xff] }
  0x1c   : > { %2108 = vmatpush3.msra.mxu0 %v349_v3  ;;  %2320 = vmatpush3.msra.mxu1 %v349_v3  ;;  %v287_v21 = vld [vmem:[%s2563_s27 + $0x230] sm:$0xff]  ;;  %v288_v23 = vld [vmem:[%s2563_s27 + $0x238] sm:$0xff]  ;;  %v289_v25 = vld [vmem:[%s2563_s27 + $0x240] sm:$0xff]  ;;  %p2384_p13 = pnand %p2383_p12, %p2523_p4  ;;  %p2391_p3 = por %p2390_p2, %p2389_p1 }
  0x1d   : > { %2109 = vmatprep.subr.mxu0 %v348_v4  ;;  %2313 = vmatprep.subr.mxu1 %v348_v4  ;;  %v226_v26 = vld [vmem:[%s2563_s27 + $0x48] sm:$0xff]  ;;  %v227_v28 = vld [vmem:[%s2563_s27 + $0x50] sm:$0xff]  ;;  %v228_v30 = vld [vmem:[%s2563_s27 + $0x58] sm:$0xff] }
  0x1e   : > { %2110 = vmatpush3.msra.mxu0 %v348_v4  ;;  %2321 = vmatpush3.msra.mxu1 %v348_v4  ;;  %v290_v27 = vld [vmem:[%s2563_s27 + $0x248] sm:$0xff]  ;;  %v291_v29 = vld [vmem:[%s2563_s27 + $0x250] sm:$0xff]  ;;  %v292_v31 = vld [vmem:[%s2563_s27 + $0x258] sm:$0xff]  ;;  %p2385_p0 = pneg %p2384_p13 }
  0x1f   : > { %2111 = vmatprep.subr.mxu0 %v347_v5  ;;  %2314 = vmatprep.subr.mxu1 %v347_v5  ;;  %v229_v32 = vld [vmem:[%s2563_s27 + $0x60] sm:$0xff]  ;;  %v230_v34 = vld [vmem:[%s2563_s27 + $0x68] sm:$0xff]  ;;  %v231_v36 = vld [vmem:[%s2563_s27 + $0x70] sm:$0xff] }
  0x20   : > { %2112 = vmatpush3.msra.mxu0 %v347_v5  ;;  %2322 = vmatpush3.msra.mxu1 %v347_v5  ;;  %v293_v33 = vld [vmem:[%s2563_s27 + $0x260] sm:$0xff]  ;;  %v294_v35 = vld [vmem:[%s2563_s27 + $0x268] sm:$0xff]  ;;  %v295_v37 = vld [vmem:[%s2563_s27 + $0x270] sm:$0xff]  ;;  %p2392_p5 = pnand %p2391_p3, %p2385_p0 }
  0x21   : > { %2113 = vmatprep.subr.mxu0 %v346_v6  ;;  %2315 = vmatprep.subr.mxu1 %v346_v6  ;;  %v232_v38 = vld [vmem:[%s2563_s27 + $0x78] sm:$0xff]  ;;  %v233_v40 = vld [vmem:[%s2563_s27 + $0x80] sm:$0xff]  ;;  %v234_v42 = vld [vmem:[%s2563_s27 + $0x88] sm:$0xff] }
  0x22   : > { %2114 = vmatpush3.msra.mxu0 %v346_v6  ;;  %2323 = vmatpush3.msra.mxu1 %v346_v6  ;;  %v296_v39 = vld [vmem:[%s2563_s27 + $0x278] sm:$0xff]  ;;  %v297_v41 = vld [vmem:[%s2563_s27 + $0x280] sm:$0xff]  ;;  %v298_v43 = vld [vmem:[%s2563_s27 + $0x288] sm:$0xff] }
  0x23   : > { %2115 = vmatprep.subr.mxu0 %v345_v7  ;;  %2316 = vmatprep.subr.mxu1 %v345_v7  ;;  %v235_v44 = vld [vmem:[%s2563_s27 + $0x90] sm:$0xff]  ;;  %v236_v46 = vld [vmem:[%s2563_s27 + $0x98] sm:$0xff]  ;;  %v237_v48 = vld [vmem:[%s2563_s27 + $0xa0] sm:$0xff] }
  0x24   : > { %2116 = vmatpush3.msra.mxu0 %v345_v7  ;;  %2324 = vmatpush3.msra.mxu1 %v345_v7  ;;  %v299_v45 = vld [vmem:[%s2563_s27 + $0x290] sm:$0xff]  ;;  %v300_v47 = vld [vmem:[%s2563_s27 + $0x298] sm:$0xff]  ;;  %v301_v49 = vld [vmem:[%s2563_s27 + $0x2a0] sm:$0xff] }
  0x25   : > { %2117 = vmatprep.mubr.msk.f32.mxu0 %vm360_vm0, %v217_v8  ;;  %2213 = vmatprep.mubr.msk.f32.mxu1 %vm360_vm0, %v281_v9  ;;  %v238_v50 = vld [vmem:[%s2563_s27 + $0xa8] sm:$0xff]  ;;  %v239_v52 = vld [vmem:[%s2563_s27 + $0xb0] sm:$0xff]  ;;  %v240_v54 = vld [vmem:[%s2563_s27 + $0xb8] sm:$0xff] }
  0x26   : > { %2118 = vmatmul.mubr.msk.f32.vlgmr.msra.gmra.mxu0 %vm360_vm0, %v218_v10  ;;  %2214 = vmatmul.mubr.msk.f32.vlgmr.msra.gmra.mxu1 %vm360_vm0, %v282_v11  ;;  %v302_v51 = vld [vmem:[%s2563_s27 + $0x2a8] sm:$0xff]  ;;  %v303_v53 = vld [vmem:[%s2563_s27 + $0x2b0] sm:$0xff]  ;;  %v304_v55 = vld [vmem:[%s2563_s27 + $0x2b8] sm:$0xff] }
  0x27   : > { %2120 = vmatprep.mubr.msk.f32.mxu0 %vm360_vm0, %v219_v12  ;;  %2216 = vmatprep.mubr.msk.f32.mxu1 %vm360_vm0, %v283_v13  ;;  %v241_v56 = vld [vmem:[%s2563_s27 + $0xc0] sm:$0xff]  ;;  %v242_v58 = vld [vmem:[%s2563_s27 + $0xc8] sm:$0xff]  ;;  %v243_v60 = vld [vmem:[%s2563_s27 + $0xd0] sm:$0xff] }
  0x28   : > { %v305_v57 = vld [vmem:[%s2563_s27 + $0x2c0] sm:$0xff]  ;;  %v306_v59 = vld [vmem:[%s2563_s27 + $0x2c8] sm:$0xff]  ;;  %v307_v61 = vld [vmem:[%s2563_s27 + $0x2d0] sm:$0xff] }
  0x29   : > { %v244_v62 = vld [vmem:[%s2563_s27 + $0xd8] sm:$0xff]  ;;  %v245_v0 = vld [vmem:[%s2563_s27 + $0xe0] sm:$0xff]  ;;  %v246_v2 = vld [vmem:[%s2563_s27 + $0xe8] sm:$0xff] }
  0x2a   : > { %2121 = vmatmul.mubr.msk.f32.gmra.mxu0 %vm360_vm0, %v220_v14  ;;  %2217 = vmatmul.mubr.msk.f32.gmra.mxu1 %vm360_vm0, %v284_v15  ;;  %v308_v63 = vld [vmem:[%s2563_s27 + $0x2d8] sm:$0xff]  ;;  %v309_v1 = vld [vmem:[%s2563_s27 + $0x2e0] sm:$0xff]  ;;  %v310_v3 = vld [vmem:[%s2563_s27 + $0x2e8] sm:$0xff] }
  0x2b   : > { %2123 = vmatprep.mubr.msk.f32.mxu0 %vm360_vm0, %v221_v16  ;;  %2219 = vmatprep.mubr.msk.f32.mxu1 %vm360_vm0, %v285_v17  ;;  %v247_v4 = vld [vmem:[%s2563_s27 + $0xf0] sm:$0xff]  ;;  %v248_v6 = vld [vmem:[%s2563_s27 + $0xf8] sm:$0xff]  ;;  %v249_v8 = vld [vmem:[%s2563_s27 + $0x100] sm:$0xff] }
  0x2c   : > { %v311_v5 = vld [vmem:[%s2563_s27 + $0x2f0] sm:$0xff]  ;;  %v312_v7 = vld [vmem:[%s2563_s27 + $0x2f8] sm:$0xff]  ;;  %v313_v9 = vld [vmem:[%s2563_s27 + $0x300] sm:$0xff] }
  0x2d   : > { %v250_v10 = vld [vmem:[%s2563_s27 + $0x108] sm:$0xff]  ;;  %v251_v12 = vld [vmem:[%s2563_s27 + $0x110] sm:$0xff]  ;;  %v252_v14 = vld [vmem:[%s2563_s27 + $0x118] sm:$0xff] }
  0x2e   : > { %2124 = vmatmul.mubr.msk.f32.gmra.mxu0 %vm360_vm0, %v222_v18  ;;  %2220 = vmatmul.mubr.msk.f32.gmra.mxu1 %vm360_vm0, %v286_v19  ;;  %v314_v11 = vld [vmem:[%s2563_s27 + $0x308] sm:$0xff]  ;;  %v315_v13 = vld [vmem:[%s2563_s27 + $0x310] sm:$0xff]  ;;  %v316_v15 = vld [vmem:[%s2563_s27 + $0x318] sm:$0xff] }
  0x2f   : > { %2126 = vmatprep.mubr.msk.f32.mxu0 %vm360_vm0, %v223_v20  ;;  %2222 = vmatprep.mubr.msk.f32.mxu1 %vm360_vm0, %v287_v21  ;;  %v253_v16 = vld [vmem:[%s2563_s27 + $0x120] sm:$0xff]  ;;  %v254_v18 = vld [vmem:[%s2563_s27 + $0x128] sm:$0xff]  ;;  %v255_v20 = vld [vmem:[%s2563_s27 + $0x130] sm:$0xff] }
  0x30   : > { %v317_v17 = vld [vmem:[%s2563_s27 + $0x320] sm:$0xff]  ;;  %v318_v19 = vld [vmem:[%s2563_s27 + $0x328] sm:$0xff]  ;;  %v319_v21 = vld [vmem:[%s2563_s27 + $0x330] sm:$0xff] }
  0x32   : > { %2127 = vmatmul.mubr.msk.f32.gmra.mxu0 %vm360_vm0, %v224_v22  ;;  %2223 = vmatmul.mubr.msk.f32.gmra.mxu1 %vm360_vm0, %v288_v23  ;;  %v256_v22 = vld [vmem:[%s2563_s27 + $0x138] sm:$0xff] }
  0x33   : > { %2129 = vmatprep.mubr.msk.f32.mxu0 %vm360_vm0, %v225_v24  ;;  %2225 = vmatprep.mubr.msk.f32.mxu1 %vm360_vm0, %v289_v25  ;;  %v320_v23 = vld [vmem:[%s2563_s27 + $0x338] sm:$0xff]  ;;  %v257_v24 = vld [vmem:[%s2563_s27 + $0x140] sm:$0xff] }
  0x34   : > { %v321_v25 = vld [vmem:[%s2563_s27 + $0x340] sm:$0xff] }
  0x36   : > { %2130 = vmatmul.mubr.msk.f32.gmra.mxu0 %vm360_vm0, %v226_v26  ;;  %2226 = vmatmul.mubr.msk.f32.gmra.mxu1 %vm360_vm0, %v290_v27  ;;  %v258_v26 = vld [vmem:[%s2563_s27 + $0x148] sm:$0xff] }
  0x37   : > { %2132 = vmatprep.mubr.msk.f32.mxu0 %vm360_vm0, %v227_v28  ;;  %2228 = vmatprep.mubr.msk.f32.mxu1 %vm360_vm0, %v291_v29  ;;  %v322_v27 = vld [vmem:[%s2563_s27 + $0x348] sm:$0xff]  ;;  %v259_v28 = vld [vmem:[%s2563_s27 + $0x150] sm:$0xff] }
  0x38   : > { %v323_v29 = vld [vmem:[%s2563_s27 + $0x350] sm:$0xff] }
  0x3a   : > { %2133 = vmatmul.mubr.msk.f32.gmra.mxu0 %vm360_vm0, %v228_v30  ;;  %2229 = vmatmul.mubr.msk.f32.gmra.mxu1 %vm360_vm0, %v292_v31  ;;  %v260_v30 = vld [vmem:[%s2563_s27 + $0x158] sm:$0xff] }
  0x3b   : > { %2135 = vmatprep.mubr.msk.f32.mxu0 %vm360_vm0, %v229_v32  ;;  %2231 = vmatprep.mubr.msk.f32.mxu1 %vm360_vm0, %v293_v33  ;;  %v324_v31 = vld [vmem:[%s2563_s27 + $0x358] sm:$0xff]  ;;  %v261_v32 = vld [vmem:[%s2563_s27 + $0x160] sm:$0xff] }
  0x3c   : > { %v325_v33 = vld [vmem:[%s2563_s27 + $0x360] sm:$0xff] }
  0x3e   : > { %2136 = vmatmul.mubr.msk.f32.gmra.mxu0 %vm360_vm0, %v230_v34  ;;  %2232 = vmatmul.mubr.msk.f32.gmra.mxu1 %vm360_vm0, %v294_v35  ;;  %v262_v34 = vld [vmem:[%s2563_s27 + $0x168] sm:$0xff] }
  0x3f   : > { %2138 = vmatprep.mubr.msk.f32.mxu0 %vm360_vm0, %v231_v36  ;;  %2234 = vmatprep.mubr.msk.f32.mxu1 %vm360_vm0, %v295_v37  ;;  %v326_v35 = vld [vmem:[%s2563_s27 + $0x368] sm:$0xff]  ;;  %v263_v36 = vld [vmem:[%s2563_s27 + $0x170] sm:$0xff] }
  0x40   : > { %v327_v37 = vld [vmem:[%s2563_s27 + $0x370] sm:$0xff] }
  0x42   : > { %2139 = vmatmul.mubr.msk.f32.gmra.mxu0 %vm360_vm0, %v232_v38  ;;  %2235 = vmatmul.mubr.msk.f32.gmra.mxu1 %vm360_vm0, %v296_v39  ;;  %v264_v38 = vld [vmem:[%s2563_s27 + $0x178] sm:$0xff] }
  0x43   : > { %2141 = vmatprep.mubr.msk.f32.mxu0 %vm360_vm0, %v233_v40  ;;  %2237 = vmatprep.mubr.msk.f32.mxu1 %vm360_vm0, %v297_v41  ;;  %v328_v39 = vld [vmem:[%s2563_s27 + $0x378] sm:$0xff]  ;;  %v265_v40 = vld [vmem:[%s2563_s27 + $0x180] sm:$0xff] }
  0x44   : > { %v329_v41 = vld [vmem:[%s2563_s27 + $0x380] sm:$0xff] }
  0x46   : > { %2142 = vmatmul.mubr.msk.f32.gmra.mxu0 %vm360_vm0, %v234_v42  ;;  %2238 = vmatmul.mubr.msk.f32.gmra.mxu1 %vm360_vm0, %v298_v43  ;;  %v266_v42 = vld [vmem:[%s2563_s27 + $0x188] sm:$0xff] }
  0x47   : > { %2144 = vmatprep.mubr.msk.f32.mxu0 %vm360_vm0, %v235_v44  ;;  %2240 = vmatprep.mubr.msk.f32.mxu1 %vm360_vm0, %v299_v45  ;;  %v330_v43 = vld [vmem:[%s2563_s27 + $0x388] sm:$0xff]  ;;  %v267_v44 = vld [vmem:[%s2563_s27 + $0x190] sm:$0xff] }
  0x48   : > { %v331_v45 = vld [vmem:[%s2563_s27 + $0x390] sm:$0xff] }
  0x4a   : > { %2145 = vmatmul.mubr.msk.f32.gmra.mxu0 %vm360_vm0, %v236_v46  ;;  %2241 = vmatmul.mubr.msk.f32.gmra.mxu1 %vm360_vm0, %v300_v47  ;;  %v268_v46 = vld [vmem:[%s2563_s27 + $0x198] sm:$0xff] }
  0x4b   : > { %2147 = vmatprep.mubr.msk.f32.mxu0 %vm360_vm0, %v237_v48  ;;  %2243 = vmatprep.mubr.msk.f32.mxu1 %vm360_vm0, %v301_v49  ;;  %v332_v47 = vld [vmem:[%s2563_s27 + $0x398] sm:$0xff]  ;;  %v269_v48 = vld [vmem:[%s2563_s27 + $0x1a0] sm:$0xff] }
  0x4c   : > { %v333_v49 = vld [vmem:[%s2563_s27 + $0x3a0] sm:$0xff] }
  0x4e   : > { %2148 = vmatmul.mubr.msk.f32.gmra.mxu0 %vm360_vm0, %v238_v50  ;;  %2244 = vmatmul.mubr.msk.f32.gmra.mxu1 %vm360_vm0, %v302_v51  ;;  %v270_v50 = vld [vmem:[%s2563_s27 + $0x1a8] sm:$0xff] }
  0x4f   : > { %2150 = vmatprep.mubr.msk.f32.mxu0 %vm360_vm0, %v239_v52  ;;  %2246 = vmatprep.mubr.msk.f32.mxu1 %vm360_vm0, %v303_v53  ;;  %v334_v51 = vld [vmem:[%s2563_s27 + $0x3a8] sm:$0xff]  ;;  %v271_v52 = vld [vmem:[%s2563_s27 + $0x1b0] sm:$0xff] }
  0x50   : > { %v335_v53 = vld [vmem:[%s2563_s27 + $0x3b0] sm:$0xff] }
  0x52   : > { %2151 = vmatmul.mubr.msk.f32.gmra.mxu0 %vm360_vm0, %v240_v54  ;;  %2247 = vmatmul.mubr.msk.f32.gmra.mxu1 %vm360_vm0, %v304_v55  ;;  %v272_v54 = vld [vmem:[%s2563_s27 + $0x1b8] sm:$0xff] }
  0x53   : > { %2153 = vmatprep.mubr.msk.f32.mxu0 %vm360_vm0, %v241_v56  ;;  %2249 = vmatprep.mubr.msk.f32.mxu1 %vm360_vm0, %v305_v57  ;;  %v336_v55 = vld [vmem:[%s2563_s27 + $0x3b8] sm:$0xff]  ;;  %v273_v56 = vld [vmem:[%s2563_s27 + $0x1c0] sm:$0xff] }
  0x54   : > { %v337_v57 = vld [vmem:[%s2563_s27 + $0x3c0] sm:$0xff] }
  0x56   : > { %2154 = vmatmul.mubr.msk.f32.gmra.mxu0 %vm360_vm0, %v242_v58  ;;  %2250 = vmatmul.mubr.msk.f32.gmra.mxu1 %vm360_vm0, %v306_v59  ;;  %v274_v58 = vld [vmem:[%s2563_s27 + $0x1c8] sm:$0xff] }
  0x57   : > { %2156 = vmatprep.mubr.msk.f32.mxu0 %vm360_vm0, %v243_v60  ;;  %2252 = vmatprep.mubr.msk.f32.mxu1 %vm360_vm0, %v307_v61  ;;  %v338_v59 = vld [vmem:[%s2563_s27 + $0x3c8] sm:$0xff]  ;;  %v275_v60 = vld [vmem:[%s2563_s27 + $0x1d0] sm:$0xff] }
  0x58   : > { %v339_v61 = vld [vmem:[%s2563_s27 + $0x3d0] sm:$0xff] }
  0x5a   : > { %2157 = vmatmul.mubr.msk.f32.gmra.mxu0 %vm360_vm0, %v244_v62  ;;  %2253 = vmatmul.mubr.msk.f32.gmra.mxu1 %vm360_vm0, %v308_v63  ;;  %v276_v62 = vld [vmem:[%s2563_s27 + $0x1d8] sm:$0xff] }
  0x5b   : > { %2159 = vmatprep.mubr.msk.f32.mxu0 %vm360_vm0, %v245_v0  ;;  %2255 = vmatprep.mubr.msk.f32.mxu1 %vm360_vm0, %v309_v1  ;;  %v340_v63 = vld [vmem:[%s2563_s27 + $0x3d8] sm:$0xff]  ;;  %v277_v0 = vld [vmem:[%s2563_s27 + $0x1e0] sm:$0xff] }
  0x5c   : > { %v341_v1 = vld [vmem:[%s2563_s27 + $0x3e0] sm:$0xff] }
  0x5e   : > { %2160 = vmatmul.mubr.msk.f32.gmra.mxu0 %vm360_vm0, %v246_v2  ;;  %2256 = vmatmul.mubr.msk.f32.gmra.mxu1 %vm360_vm0, %v310_v3  ;;  %v278_v2 = vld [vmem:[%s2563_s27 + $0x1e8] sm:$0xff] }
  0x5f   : > { %2162 = vmatprep.mubr.msk.f32.mxu0 %vm360_vm0, %v247_v4  ;;  %2258 = vmatprep.mubr.msk.f32.mxu1 %vm360_vm0, %v311_v5  ;;  %v342_v3 = vld [vmem:[%s2563_s27 + $0x3e8] sm:$0xff]  ;;  %v279_v4 = vld [vmem:[%s2563_s27 + $0x1f0] sm:$0xff] }
  0x60   : > { %v343_v5 = vld [vmem:[%s2563_s27 + $0x3f0] sm:$0xff] }
  0x62   : > { %2163 = vmatmul.mubr.msk.f32.gmra.mxu0 %vm360_vm0, %v248_v6  ;;  %2259 = vmatmul.mubr.msk.f32.gmra.mxu1 %vm360_vm0, %v312_v7  ;;  %v280_v6 = vld [vmem:[%s2563_s27 + $0x1f8] sm:$0xff] }
  0x63   : > { %2165 = vmatprep.mubr.msk.f32.mxu0 %vm360_vm0, %v249_v8  ;;  %2261 = vmatprep.mubr.msk.f32.mxu1 %vm360_vm0, %v313_v9  ;;  %v344_v7 = vld [vmem:[%s2563_s27 + $0x3f8] sm:$0xff]  ;;  %v2828_v8 = vld [vmem:[%s3148_s2] ss:$0 sm:$0xff] }
  0x66   : > { %2166 = vmatmul.mubr.msk.f32.gmra.mxu0 %vm360_vm0, %v250_v10  ;;  %2262 = vmatmul.mubr.msk.f32.gmra.mxu1 %vm360_vm0, %v314_v11 }
  0x67   : > { %2168 = vmatprep.mubr.msk.f32.mxu0 %vm360_vm0, %v251_v12  ;;  %2264 = vmatprep.mubr.msk.f32.mxu1 %vm360_vm0, %v315_v13 }
  0x6a   : > { %2169 = vmatmul.mubr.msk.f32.gmra.mxu0 %vm360_vm0, %v252_v14  ;;  %2265 = vmatmul.mubr.msk.f32.gmra.mxu1 %vm360_vm0, %v316_v15 }
  0x6b   : > { %2171 = vmatprep.mubr.msk.f32.mxu0 %vm360_vm0, %v253_v16  ;;  %2267 = vmatprep.mubr.msk.f32.mxu1 %vm360_vm0, %v317_v17 }
  0x6e   : > { %2172 = vmatmul.mubr.msk.f32.gmra.mxu0 %vm360_vm0, %v254_v18  ;;  %2268 = vmatmul.mubr.msk.f32.gmra.mxu1 %vm360_vm0, %v318_v19 }
  0x6f   : > { %2174 = vmatprep.mubr.msk.f32.mxu0 %vm360_vm0, %v255_v20  ;;  %2270 = vmatprep.mubr.msk.f32.mxu1 %vm360_vm0, %v319_v21 }
  0x72   : > { %2175 = vmatmul.mubr.msk.f32.gmra.mxu0 %vm360_vm0, %v256_v22  ;;  %2271 = vmatmul.mubr.msk.f32.gmra.mxu1 %vm360_vm0, %v320_v23 }
  0x73   : > { %2177 = vmatprep.mubr.msk.f32.mxu0 %vm360_vm0, %v257_v24  ;;  %2273 = vmatprep.mubr.msk.f32.mxu1 %vm360_vm0, %v321_v25 }
  0x76   : > { %2178 = vmatmul.mubr.msk.f32.gmra.mxu0 %vm360_vm0, %v258_v26  ;;  %2274 = vmatmul.mubr.msk.f32.gmra.mxu1 %vm360_vm0, %v322_v27 }
  0x77   : > { %2180 = vmatprep.mubr.msk.f32.mxu0 %vm360_vm0, %v259_v28  ;;  %2276 = vmatprep.mubr.msk.f32.mxu1 %vm360_vm0, %v323_v29 }
  0x7a   : > { %2181 = vmatmul.mubr.msk.f32.gmra.mxu0 %vm360_vm0, %v260_v30  ;;  %2277 = vmatmul.mubr.msk.f32.gmra.mxu1 %vm360_vm0, %v324_v31 }
  0x7b   : > { %2183 = vmatprep.mubr.msk.f32.mxu0 %vm360_vm0, %v261_v32  ;;  %2279 = vmatprep.mubr.msk.f32.mxu1 %vm360_vm0, %v325_v33 }
  0x7e   : > { %2184 = vmatmul.mubr.msk.f32.gmra.mxu0 %vm360_vm0, %v262_v34  ;;  %2280 = vmatmul.mubr.msk.f32.gmra.mxu1 %vm360_vm0, %v326_v35 }
  0x7f   : > { %2186 = vmatprep.mubr.msk.f32.mxu0 %vm360_vm0, %v263_v36  ;;  %2282 = vmatprep.mubr.msk.f32.mxu1 %vm360_vm0, %v327_v37 }
  0x82   : > { %2187 = vmatmul.mubr.msk.f32.gmra.mxu0 %vm360_vm0, %v264_v38  ;;  %2283 = vmatmul.mubr.msk.f32.gmra.mxu1 %vm360_vm0, %v328_v39 }
  0x83   : > { %2189 = vmatprep.mubr.msk.f32.mxu0 %vm360_vm0, %v265_v40  ;;  %2285 = vmatprep.mubr.msk.f32.mxu1 %vm360_vm0, %v329_v41 }
  0x86   : > { %2190 = vmatmul.mubr.msk.f32.gmra.mxu0 %vm360_vm0, %v266_v42  ;;  %2286 = vmatmul.mubr.msk.f32.gmra.mxu1 %vm360_vm0, %v330_v43 }
  0x87   : > { %2192 = vmatprep.mubr.msk.f32.mxu0 %vm360_vm0, %v267_v44  ;;  %2288 = vmatprep.mubr.msk.f32.mxu1 %vm360_vm0, %v331_v45 }
  0x8a   : > { %2193 = vmatmul.mubr.msk.f32.gmra.mxu0 %vm360_vm0, %v268_v46  ;;  %2289 = vmatmul.mubr.msk.f32.gmra.mxu1 %vm360_vm0, %v332_v47 }
  0x8b   : > { %2195 = vmatprep.mubr.msk.f32.mxu0 %vm360_vm0, %v269_v48  ;;  %2291 = vmatprep.mubr.msk.f32.mxu1 %vm360_vm0, %v333_v49 }
  0x8e   : > { %2196 = vmatmul.mubr.msk.f32.gmra.mxu0 %vm360_vm0, %v270_v50  ;;  %2292 = vmatmul.mubr.msk.f32.gmra.mxu1 %vm360_vm0, %v334_v51 }
  0x8f   : > { %2198 = vmatprep.mubr.msk.f32.mxu0 %vm360_vm0, %v271_v52  ;;  %2294 = vmatprep.mubr.msk.f32.mxu1 %vm360_vm0, %v335_v53 }
  0x92   : > { %2199 = vmatmul.mubr.msk.f32.gmra.mxu0 %vm360_vm0, %v272_v54  ;;  %2295 = vmatmul.mubr.msk.f32.gmra.mxu1 %vm360_vm0, %v336_v55 }
  0x93   : > { %2201 = vmatprep.mubr.msk.f32.mxu0 %vm360_vm0, %v273_v56  ;;  %2297 = vmatprep.mubr.msk.f32.mxu1 %vm360_vm0, %v337_v57 }
  0x96   : > { %2202 = vmatmul.mubr.msk.f32.gmra.mxu0 %vm360_vm0, %v274_v58  ;;  %2298 = vmatmul.mubr.msk.f32.gmra.mxu1 %vm360_vm0, %v338_v59 }
  0x97   : > { %2204 = vmatprep.mubr.msk.f32.mxu0 %vm360_vm0, %v275_v60  ;;  %2300 = vmatprep.mubr.msk.f32.mxu1 %vm360_vm0, %v339_v61 }
  0x9a   : > { %2205 = vmatmul.mubr.msk.f32.gmra.mxu0 %vm360_vm0, %v276_v62  ;;  %2301 = vmatmul.mubr.msk.f32.gmra.mxu1 %vm360_vm0, %v340_v63 }
  0x9b   : > { %2207 = vmatprep.mubr.msk.f32.mxu0 %vm360_vm0, %v277_v0  ;;  %2303 = vmatprep.mubr.msk.f32.mxu1 %vm360_vm0, %v341_v1 }
  0x9e   : > { %2208 = vmatmul.mubr.msk.f32.gmra.mxu0 %vm360_vm0, %v278_v2  ;;  %2304 = vmatmul.mubr.msk.f32.gmra.mxu1 %vm360_vm0, %v342_v3 }
  0x9f   : > { %2210 = vmatprep.mubr.msk.f32.mxu0 %vm360_vm0, %v279_v4  ;;  %2306 = vmatprep.mubr.msk.f32.mxu1 %vm360_vm0, %v343_v5 }
  0xa2   : > { %2211 = vmatmul.mubr.msk.f32.gmra.mxu0 %vm360_vm0, %v280_v6  ;;  %2307 = vmatmul.mubr.msk.f32.gmra.mxu1 %vm360_vm0, %v344_v7 }
  0xe6   : > { %v2119_v9 = vpop.f32.mrf.mxu0  ;;  %v2215_v10 = vpop.f32.mrf.mxu1 }
  0xe7   : > { %v817_v11 = vadd.f32 %v2119_v9, %v2828_v8  ;;  %v1137_v12 = vadd.f32 %v2215_v10, %v2828_v8 }
  0xe8   : > { %v811_v13 = vpop.f32.mrf.mxu0  ;;  %v1131_v14 = vpop.f32.mrf.mxu1 }
  0xe9   : > { %v1451_v15 = vmax.f32 %v817_v11, 0.0  ;;  %v1515_v16 = vmax.f32 %v1137_v12, 0.0  ;;  %v812_v17 = vadd.f32 %v2828_v8, %v811_v13  ;;  %v1132_v18 = vadd.f32 %v2828_v8, %v1131_v14 }
  0xea   : > { %v2122_v19 = vpop.f32.mrf.mxu0  ;;  %v2218_v20 = vpop.f32.mrf.mxu1 }
  0xeb   : > { %1579 = vst [vmem:[%s2836_s7 + $0x8] sm:$0xff] %v1451_v15  ;;  %1643 = vst [vmem:[%s2836_s7 + $0x208] sm:$0xff] %v1515_v16  ;;  %v1450_v21 = vmax.f32 %v812_v17, 0.0  ;;  %v1514_v22 = vmax.f32 %v1132_v18, 0.0  ;;  %v827_v23 = vadd.f32 %v2122_v19, %v2828_v8  ;;  %v1147_v24 = vadd.f32 %v2218_v20, %v2828_v8 }
  0xec   : > { %v821_v25 = vpop.f32.mrf.mxu0  ;;  %v1141_v26 = vpop.f32.mrf.mxu1 }
  0xed   : > { %1578 = vst [vmem:[%s2836_s7] sm:$0xff] %v1450_v21  ;;  %1642 = vst [vmem:[%s2836_s7 + $0x200] sm:$0xff] %v1514_v22  ;;  %v1453_v27 = vmax.f32 %v827_v23, 0.0  ;;  %v1517_v28 = vmax.f32 %v1147_v24, 0.0  ;;  %v822_v29 = vadd.f32 %v2828_v8, %v821_v25  ;;  %v1142_v30 = vadd.f32 %v2828_v8, %v1141_v26 }
  0xee   : > { %v2125_v31 = vpop.f32.mrf.mxu0  ;;  %v2221_v32 = vpop.f32.mrf.mxu1 }
  0xef   : > { %1581 = vst [vmem:[%s2836_s7 + $0x18] sm:$0xff] %v1453_v27  ;;  %1645 = vst [vmem:[%s2836_s7 + $0x218] sm:$0xff] %v1517_v28  ;;  %v1452_v33 = vmax.f32 %v822_v29, 0.0  ;;  %v1516_v34 = vmax.f32 %v1142_v30, 0.0  ;;  %v837_v35 = vadd.f32 %v2125_v31, %v2828_v8  ;;  %v1157_v36 = vadd.f32 %v2221_v32, %v2828_v8 }
  0xf0   : > { %v831_v37 = vpop.f32.mrf.mxu0  ;;  %v1151_v38 = vpop.f32.mrf.mxu1 }
  0xf1   : > { %1580 = vst [vmem:[%s2836_s7 + $0x10] sm:$0xff] %v1452_v33  ;;  %1644 = vst [vmem:[%s2836_s7 + $0x210] sm:$0xff] %v1516_v34  ;;  %v1455_v39 = vmax.f32 %v837_v35, 0.0  ;;  %v1519_v40 = vmax.f32 %v1157_v36, 0.0  ;;  %v832_v41 = vadd.f32 %v2828_v8, %v831_v37  ;;  %v1152_v42 = vadd.f32 %v2828_v8, %v1151_v38 }
  0xf2   : > { %v2128_v43 = vpop.f32.mrf.mxu0  ;;  %v2224_v44 = vpop.f32.mrf.mxu1 }
  0xf3   : > { %1583 = vst [vmem:[%s2836_s7 + $0x28] sm:$0xff] %v1455_v39  ;;  %1647 = vst [vmem:[%s2836_s7 + $0x228] sm:$0xff] %v1519_v40  ;;  %v1454_v45 = vmax.f32 %v832_v41, 0.0  ;;  %v1518_v46 = vmax.f32 %v1152_v42, 0.0  ;;  %v847_v47 = vadd.f32 %v2128_v43, %v2828_v8  ;;  %v1167_v48 = vadd.f32 %v2224_v44, %v2828_v8 }
  0xf4   : > { %v841_v49 = vpop.f32.mrf.mxu0  ;;  %v1161_v50 = vpop.f32.mrf.mxu1 }
  0xf5   : > { %1582 = vst [vmem:[%s2836_s7 + $0x20] sm:$0xff] %v1454_v45  ;;  %1646 = vst [vmem:[%s2836_s7 + $0x220] sm:$0xff] %v1518_v46  ;;  %v1457_v51 = vmax.f32 %v847_v47, 0.0  ;;  %v1521_v52 = vmax.f32 %v1167_v48, 0.0  ;;  %v842_v53 = vadd.f32 %v2828_v8, %v841_v49  ;;  %v1162_v54 = vadd.f32 %v2828_v8, %v1161_v50 }
  0xf6   : > { %v2131_v55 = vpop.f32.mrf.mxu0  ;;  %v2227_v56 = vpop.f32.mrf.mxu1 }
  0xf7   : > { %1585 = vst [vmem:[%s2836_s7 + $0x38] sm:$0xff] %v1457_v51  ;;  %1649 = vst [vmem:[%s2836_s7 + $0x238] sm:$0xff] %v1521_v52  ;;  %v1456_v57 = vmax.f32 %v842_v53, 0.0  ;;  %v1520_v58 = vmax.f32 %v1162_v54, 0.0  ;;  %v857_v59 = vadd.f32 %v2131_v55, %v2828_v8  ;;  %v1177_v60 = vadd.f32 %v2227_v56, %v2828_v8 }
  0xf8   : > { %v851_v61 = vpop.f32.mrf.mxu0  ;;  %v1171_v62 = vpop.f32.mrf.mxu1 }
  0xf9   : > { %1584 = vst [vmem:[%s2836_s7 + $0x30] sm:$0xff] %v1456_v57  ;;  %1648 = vst [vmem:[%s2836_s7 + $0x230] sm:$0xff] %v1520_v58  ;;  %v1459_v63 = vmax.f32 %v857_v59, 0.0  ;;  %v1523_v0 = vmax.f32 %v1177_v60, 0.0  ;;  %v852_v1 = vadd.f32 %v2828_v8, %v851_v61  ;;  %v1172_v2 = vadd.f32 %v2828_v8, %v1171_v62 }
  0xfa   : > { %v2134_v3 = vpop.f32.mrf.mxu0  ;;  %v2230_v4 = vpop.f32.mrf.mxu1 }
  0xfb   : > { %1587 = vst [vmem:[%s2836_s7 + $0x48] sm:$0xff] %v1459_v63  ;;  %1651 = vst [vmem:[%s2836_s7 + $0x248] sm:$0xff] %v1523_v0  ;;  %v1458_v5 = vmax.f32 %v852_v1, 0.0  ;;  %v1522_v6 = vmax.f32 %v1172_v2, 0.0  ;;  %v867_v7 = vadd.f32 %v2134_v3, %v2828_v8  ;;  %v1187_v9 = vadd.f32 %v2230_v4, %v2828_v8 }
  0xfc   : > { %v861_v10 = vpop.f32.mrf.mxu0  ;;  %v1181_v11 = vpop.f32.mrf.mxu1 }
  0xfd   : > { %1586 = vst [vmem:[%s2836_s7 + $0x40] sm:$0xff] %v1458_v5  ;;  %1650 = vst [vmem:[%s2836_s7 + $0x240] sm:$0xff] %v1522_v6  ;;  %v1461_v12 = vmax.f32 %v867_v7, 0.0  ;;  %v1525_v13 = vmax.f32 %v1187_v9, 0.0  ;;  %v862_v14 = vadd.f32 %v2828_v8, %v861_v10  ;;  %v1182_v15 = vadd.f32 %v2828_v8, %v1181_v11 }
  0xfe   : > { %v2137_v16 = vpop.f32.mrf.mxu0  ;;  %v2233_v17 = vpop.f32.mrf.mxu1 }
  0xff   : > { %1589 = vst [vmem:[%s2836_s7 + $0x58] sm:$0xff] %v1461_v12  ;;  %1653 = vst [vmem:[%s2836_s7 + $0x258] sm:$0xff] %v1525_v13  ;;  %v1460_v18 = vmax.f32 %v862_v14, 0.0  ;;  %v1524_v19 = vmax.f32 %v1182_v15, 0.0  ;;  %v877_v20 = vadd.f32 %v2137_v16, %v2828_v8  ;;  %v1197_v21 = vadd.f32 %v2233_v17, %v2828_v8 }
 0x100   : > { %v871_v22 = vpop.f32.mrf.mxu0  ;;  %v1191_v23 = vpop.f32.mrf.mxu1 }
 0x101   : > { %1588 = vst [vmem:[%s2836_s7 + $0x50] sm:$0xff] %v1460_v18  ;;  %1652 = vst [vmem:[%s2836_s7 + $0x250] sm:$0xff] %v1524_v19  ;;  %v1463_v24 = vmax.f32 %v877_v20, 0.0  ;;  %v1527_v25 = vmax.f32 %v1197_v21, 0.0  ;;  %v872_v26 = vadd.f32 %v2828_v8, %v871_v22  ;;  %v1192_v27 = vadd.f32 %v2828_v8, %v1191_v23 }
 0x102   : > { %v2140_v28 = vpop.f32.mrf.mxu0  ;;  %v2236_v29 = vpop.f32.mrf.mxu1 }
 0x103   : > { %1591 = vst [vmem:[%s2836_s7 + $0x68] sm:$0xff] %v1463_v24  ;;  %1655 = vst [vmem:[%s2836_s7 + $0x268] sm:$0xff] %v1527_v25  ;;  %v1462_v30 = vmax.f32 %v872_v26, 0.0  ;;  %v1526_v31 = vmax.f32 %v1192_v27, 0.0  ;;  %v887_v32 = vadd.f32 %v2140_v28, %v2828_v8  ;;  %v1207_v33 = vadd.f32 %v2236_v29, %v2828_v8 }
 0x104   : > { %v881_v34 = vpop.f32.mrf.mxu0  ;;  %v1201_v35 = vpop.f32.mrf.mxu1 }
 0x105   : > { %1590 = vst [vmem:[%s2836_s7 + $0x60] sm:$0xff] %v1462_v30  ;;  %1654 = vst [vmem:[%s2836_s7 + $0x260] sm:$0xff] %v1526_v31  ;;  %v1465_v36 = vmax.f32 %v887_v32, 0.0  ;;  %v1529_v37 = vmax.f32 %v1207_v33, 0.0  ;;  %v882_v38 = vadd.f32 %v2828_v8, %v881_v34  ;;  %v1202_v39 = vadd.f32 %v2828_v8, %v1201_v35 }
 0x106   : > { %v2143_v40 = vpop.f32.mrf.mxu0  ;;  %v2239_v41 = vpop.f32.mrf.mxu1 }
 0x107   : > { %1593 = vst [vmem:[%s2836_s7 + $0x78] sm:$0xff] %v1465_v36  ;;  %1657 = vst [vmem:[%s2836_s7 + $0x278] sm:$0xff] %v1529_v37  ;;  %v1464_v42 = vmax.f32 %v882_v38, 0.0  ;;  %v1528_v43 = vmax.f32 %v1202_v39, 0.0  ;;  %v897_v44 = vadd.f32 %v2143_v40, %v2828_v8  ;;  %v1217_v45 = vadd.f32 %v2239_v41, %v2828_v8 }
 0x108   : > { %v891_v46 = vpop.f32.mrf.mxu0  ;;  %v1211_v47 = vpop.f32.mrf.mxu1 }
 0x109   : > { %1592 = vst [vmem:[%s2836_s7 + $0x70] sm:$0xff] %v1464_v42  ;;  %1656 = vst [vmem:[%s2836_s7 + $0x270] sm:$0xff] %v1528_v43  ;;  %v1467_v48 = vmax.f32 %v897_v44, 0.0  ;;  %v1531_v49 = vmax.f32 %v1217_v45, 0.0  ;;  %v892_v50 = vadd.f32 %v2828_v8, %v891_v46  ;;  %v1212_v51 = vadd.f32 %v2828_v8, %v1211_v47 }
 0x10a   : > { %v2146_v52 = vpop.f32.mrf.mxu0  ;;  %v2242_v53 = vpop.f32.mrf.mxu1 }
 0x10b   : > { %1595 = vst [vmem:[%s2836_s7 + $0x88] sm:$0xff] %v1467_v48  ;;  %1659 = vst [vmem:[%s2836_s7 + $0x288] sm:$0xff] %v1531_v49  ;;  %v1466_v54 = vmax.f32 %v892_v50, 0.0  ;;  %v1530_v55 = vmax.f32 %v1212_v51, 0.0  ;;  %v907_v56 = vadd.f32 %v2146_v52, %v2828_v8  ;;  %v1227_v57 = vadd.f32 %v2242_v53, %v2828_v8 }
 0x10c   : > { %v901_v58 = vpop.f32.mrf.mxu0  ;;  %v1221_v59 = vpop.f32.mrf.mxu1 }
 0x10d   : > { %1594 = vst [vmem:[%s2836_s7 + $0x80] sm:$0xff] %v1466_v54  ;;  %1658 = vst [vmem:[%s2836_s7 + $0x280] sm:$0xff] %v1530_v55  ;;  %v1469_v60 = vmax.f32 %v907_v56, 0.0  ;;  %v1533_v61 = vmax.f32 %v1227_v57, 0.0  ;;  %v902_v62 = vadd.f32 %v2828_v8, %v901_v58  ;;  %v1222_v63 = vadd.f32 %v2828_v8, %v1221_v59 }
 0x10e   : > { %v2149_v0 = vpop.f32.mrf.mxu0  ;;  %v2245_v1 = vpop.f32.mrf.mxu1 }
 0x10f   : > { %1597 = vst [vmem:[%s2836_s7 + $0x98] sm:$0xff] %v1469_v60  ;;  %1661 = vst [vmem:[%s2836_s7 + $0x298] sm:$0xff] %v1533_v61  ;;  %v1468_v2 = vmax.f32 %v902_v62, 0.0  ;;  %v1532_v3 = vmax.f32 %v1222_v63, 0.0  ;;  %v917_v4 = vadd.f32 %v2149_v0, %v2828_v8  ;;  %v1237_v5 = vadd.f32 %v2245_v1, %v2828_v8 }
 0x110   : > { %v911_v6 = vpop.f32.mrf.mxu0  ;;  %v1231_v7 = vpop.f32.mrf.mxu1 }
 0x111   : > { %1596 = vst [vmem:[%s2836_s7 + $0x90] sm:$0xff] %v1468_v2  ;;  %1660 = vst [vmem:[%s2836_s7 + $0x290] sm:$0xff] %v1532_v3  ;;  %v1471_v9 = vmax.f32 %v917_v4, 0.0  ;;  %v1535_v10 = vmax.f32 %v1237_v5, 0.0  ;;  %v912_v11 = vadd.f32 %v2828_v8, %v911_v6  ;;  %v1232_v12 = vadd.f32 %v2828_v8, %v1231_v7 }
 0x112   : > { %v2152_v13 = vpop.f32.mrf.mxu0  ;;  %v2248_v14 = vpop.f32.mrf.mxu1 }
 0x113   : > { %1599 = vst [vmem:[%s2836_s7 + $0xa8] sm:$0xff] %v1471_v9  ;;  %1663 = vst [vmem:[%s2836_s7 + $0x2a8] sm:$0xff] %v1535_v10  ;;  %v1470_v15 = vmax.f32 %v912_v11, 0.0  ;;  %v1534_v16 = vmax.f32 %v1232_v12, 0.0  ;;  %v927_v17 = vadd.f32 %v2152_v13, %v2828_v8  ;;  %v1247_v18 = vadd.f32 %v2248_v14, %v2828_v8 }
 0x114   : > { %v921_v19 = vpop.f32.mrf.mxu0  ;;  %v1241_v20 = vpop.f32.mrf.mxu1 }
 0x115   : > { %1598 = vst [vmem:[%s2836_s7 + $0xa0] sm:$0xff] %v1470_v15  ;;  %1662 = vst [vmem:[%s2836_s7 + $0x2a0] sm:$0xff] %v1534_v16  ;;  %v1473_v21 = vmax.f32 %v927_v17, 0.0  ;;  %v1537_v22 = vmax.f32 %v1247_v18, 0.0  ;;  %v922_v23 = vadd.f32 %v2828_v8, %v921_v19  ;;  %v1242_v24 = vadd.f32 %v2828_v8, %v1241_v20 }
 0x116   : > { %v2155_v25 = vpop.f32.mrf.mxu0  ;;  %v2251_v26 = vpop.f32.mrf.mxu1 }
 0x117   : > { %1601 = vst [vmem:[%s2836_s7 + $0xb8] sm:$0xff] %v1473_v21  ;;  %1665 = vst [vmem:[%s2836_s7 + $0x2b8] sm:$0xff] %v1537_v22  ;;  %v1472_v27 = vmax.f32 %v922_v23, 0.0  ;;  %v1536_v28 = vmax.f32 %v1242_v24, 0.0  ;;  %v937_v29 = vadd.f32 %v2155_v25, %v2828_v8  ;;  %v1257_v30 = vadd.f32 %v2251_v26, %v2828_v8 }
 0x118   : > { %v931_v31 = vpop.f32.mrf.mxu0  ;;  %v1251_v32 = vpop.f32.mrf.mxu1 }
 0x119   : > { %1600 = vst [vmem:[%s2836_s7 + $0xb0] sm:$0xff] %v1472_v27  ;;  %1664 = vst [vmem:[%s2836_s7 + $0x2b0] sm:$0xff] %v1536_v28  ;;  %v1475_v33 = vmax.f32 %v937_v29, 0.0  ;;  %v1539_v34 = vmax.f32 %v1257_v30, 0.0  ;;  %v932_v35 = vadd.f32 %v2828_v8, %v931_v31  ;;  %v1252_v36 = vadd.f32 %v2828_v8, %v1251_v32 }
 0x11a   : > { %v2158_v37 = vpop.f32.mrf.mxu0  ;;  %v2254_v38 = vpop.f32.mrf.mxu1 }
 0x11b   : > { %1603 = vst [vmem:[%s2836_s7 + $0xc8] sm:$0xff] %v1475_v33  ;;  %1667 = vst [vmem:[%s2836_s7 + $0x2c8] sm:$0xff] %v1539_v34  ;;  %v1474_v39 = vmax.f32 %v932_v35, 0.0  ;;  %v1538_v40 = vmax.f32 %v1252_v36, 0.0  ;;  %v947_v41 = vadd.f32 %v2158_v37, %v2828_v8  ;;  %v1267_v42 = vadd.f32 %v2254_v38, %v2828_v8 }
 0x11c   : > { %v941_v43 = vpop.f32.mrf.mxu0  ;;  %v1261_v44 = vpop.f32.mrf.mxu1 }
 0x11d   : > { %1602 = vst [vmem:[%s2836_s7 + $0xc0] sm:$0xff] %v1474_v39  ;;  %1666 = vst [vmem:[%s2836_s7 + $0x2c0] sm:$0xff] %v1538_v40  ;;  %v1477_v45 = vmax.f32 %v947_v41, 0.0  ;;  %v1541_v46 = vmax.f32 %v1267_v42, 0.0  ;;  %v942_v47 = vadd.f32 %v2828_v8, %v941_v43  ;;  %v1262_v48 = vadd.f32 %v2828_v8, %v1261_v44 }
 0x11e   : > { %v2161_v49 = vpop.f32.mrf.mxu0  ;;  %v2257_v50 = vpop.f32.mrf.mxu1 }
 0x11f   : > { %1605 = vst [vmem:[%s2836_s7 + $0xd8] sm:$0xff] %v1477_v45  ;;  %1669 = vst [vmem:[%s2836_s7 + $0x2d8] sm:$0xff] %v1541_v46  ;;  %v1476_v51 = vmax.f32 %v942_v47, 0.0  ;;  %v1540_v52 = vmax.f32 %v1262_v48, 0.0  ;;  %v957_v53 = vadd.f32 %v2161_v49, %v2828_v8  ;;  %v1277_v54 = vadd.f32 %v2257_v50, %v2828_v8 }
 0x120   : > { %v951_v55 = vpop.f32.mrf.mxu0  ;;  %v1271_v56 = vpop.f32.mrf.mxu1 }
 0x121   : > { %1604 = vst [vmem:[%s2836_s7 + $0xd0] sm:$0xff] %v1476_v51  ;;  %1668 = vst [vmem:[%s2836_s7 + $0x2d0] sm:$0xff] %v1540_v52  ;;  %v1479_v57 = vmax.f32 %v957_v53, 0.0  ;;  %v1543_v58 = vmax.f32 %v1277_v54, 0.0  ;;  %v952_v59 = vadd.f32 %v2828_v8, %v951_v55  ;;  %v1272_v60 = vadd.f32 %v2828_v8, %v1271_v56 }
 0x122   : > { %v2164_v61 = vpop.f32.mrf.mxu0  ;;  %v2260_v62 = vpop.f32.mrf.mxu1 }
 0x123   : > { %1607 = vst [vmem:[%s2836_s7 + $0xe8] sm:$0xff] %v1479_v57  ;;  %1671 = vst [vmem:[%s2836_s7 + $0x2e8] sm:$0xff] %v1543_v58  ;;  %v1478_v63 = vmax.f32 %v952_v59, 0.0  ;;  %v1542_v0 = vmax.f32 %v1272_v60, 0.0  ;;  %v967_v1 = vadd.f32 %v2164_v61, %v2828_v8  ;;  %v1287_v2 = vadd.f32 %v2260_v62, %v2828_v8 }
 0x124   : > { %v961_v3 = vpop.f32.mrf.mxu0  ;;  %v1281_v4 = vpop.f32.mrf.mxu1 }
 0x125   : > { %1606 = vst [vmem:[%s2836_s7 + $0xe0] sm:$0xff] %v1478_v63  ;;  %1670 = vst [vmem:[%s2836_s7 + $0x2e0] sm:$0xff] %v1542_v0  ;;  %v1481_v5 = vmax.f32 %v967_v1, 0.0  ;;  %v1545_v6 = vmax.f32 %v1287_v2, 0.0  ;;  %v962_v7 = vadd.f32 %v2828_v8, %v961_v3  ;;  %v1282_v9 = vadd.f32 %v2828_v8, %v1281_v4 }
 0x126   : > { %v2167_v10 = vpop.f32.mrf.mxu0  ;;  %v2263_v11 = vpop.f32.mrf.mxu1 }
 0x127   : > { %1609 = vst [vmem:[%s2836_s7 + $0xf8] sm:$0xff] %v1481_v5  ;;  %1673 = vst [vmem:[%s2836_s7 + $0x2f8] sm:$0xff] %v1545_v6  ;;  %v1480_v12 = vmax.f32 %v962_v7, 0.0  ;;  %v1544_v13 = vmax.f32 %v1282_v9, 0.0  ;;  %v977_v14 = vadd.f32 %v2167_v10, %v2828_v8  ;;  %v1297_v15 = vadd.f32 %v2263_v11, %v2828_v8 }
 0x128   : > { %v971_v16 = vpop.f32.mrf.mxu0  ;;  %v1291_v17 = vpop.f32.mrf.mxu1 }
 0x129   : > { %1608 = vst [vmem:[%s2836_s7 + $0xf0] sm:$0xff] %v1480_v12  ;;  %1672 = vst [vmem:[%s2836_s7 + $0x2f0] sm:$0xff] %v1544_v13  ;;  %v1483_v18 = vmax.f32 %v977_v14, 0.0  ;;  %v1547_v19 = vmax.f32 %v1297_v15, 0.0  ;;  %v972_v20 = vadd.f32 %v2828_v8, %v971_v16  ;;  %v1292_v21 = vadd.f32 %v2828_v8, %v1291_v17 }
 0x12a   : > { %v2170_v22 = vpop.f32.mrf.mxu0  ;;  %v2266_v23 = vpop.f32.mrf.mxu1 }
 0x12b   : > { %1611 = vst [vmem:[%s2836_s7 + $0x108] sm:$0xff] %v1483_v18  ;;  %1675 = vst [vmem:[%s2836_s7 + $0x308] sm:$0xff] %v1547_v19  ;;  %v1482_v24 = vmax.f32 %v972_v20, 0.0  ;;  %v1546_v25 = vmax.f32 %v1292_v21, 0.0  ;;  %v987_v26 = vadd.f32 %v2170_v22, %v2828_v8  ;;  %v1307_v27 = vadd.f32 %v2266_v23, %v2828_v8 }
 0x12c   : > { %v981_v28 = vpop.f32.mrf.mxu0  ;;  %v1301_v29 = vpop.f32.mrf.mxu1 }
 0x12d   : > { %1610 = vst [vmem:[%s2836_s7 + $0x100] sm:$0xff] %v1482_v24  ;;  %1674 = vst [vmem:[%s2836_s7 + $0x300] sm:$0xff] %v1546_v25  ;;  %v1485_v30 = vmax.f32 %v987_v26, 0.0  ;;  %v1549_v31 = vmax.f32 %v1307_v27, 0.0  ;;  %v982_v32 = vadd.f32 %v2828_v8, %v981_v28  ;;  %v1302_v33 = vadd.f32 %v2828_v8, %v1301_v29 }
 0x12e   : > { %v2173_v34 = vpop.f32.mrf.mxu0  ;;  %v2269_v35 = vpop.f32.mrf.mxu1 }
 0x12f   : > { %1613 = vst [vmem:[%s2836_s7 + $0x118] sm:$0xff] %v1485_v30  ;;  %1677 = vst [vmem:[%s2836_s7 + $0x318] sm:$0xff] %v1549_v31  ;;  %v1484_v36 = vmax.f32 %v982_v32, 0.0  ;;  %v1548_v37 = vmax.f32 %v1302_v33, 0.0  ;;  %v997_v38 = vadd.f32 %v2173_v34, %v2828_v8  ;;  %v1317_v39 = vadd.f32 %v2269_v35, %v2828_v8 }
 0x130   : > { %v991_v40 = vpop.f32.mrf.mxu0  ;;  %v1311_v41 = vpop.f32.mrf.mxu1 }
 0x131   : > { %1612 = vst [vmem:[%s2836_s7 + $0x110] sm:$0xff] %v1484_v36  ;;  %1676 = vst [vmem:[%s2836_s7 + $0x310] sm:$0xff] %v1548_v37  ;;  %v1487_v42 = vmax.f32 %v997_v38, 0.0  ;;  %v1551_v43 = vmax.f32 %v1317_v39, 0.0  ;;  %v992_v44 = vadd.f32 %v2828_v8, %v991_v40  ;;  %v1312_v45 = vadd.f32 %v2828_v8, %v1311_v41 }
 0x132   : > { %v2176_v46 = vpop.f32.mrf.mxu0  ;;  %v2272_v47 = vpop.f32.mrf.mxu1 }
 0x133   : > { %1615 = vst [vmem:[%s2836_s7 + $0x128] sm:$0xff] %v1487_v42  ;;  %1679 = vst [vmem:[%s2836_s7 + $0x328] sm:$0xff] %v1551_v43  ;;  %v1486_v48 = vmax.f32 %v992_v44, 0.0  ;;  %v1550_v49 = vmax.f32 %v1312_v45, 0.0  ;;  %v1007_v50 = vadd.f32 %v2176_v46, %v2828_v8  ;;  %v1327_v51 = vadd.f32 %v2272_v47, %v2828_v8 }
 0x134   : > { %v1001_v52 = vpop.f32.mrf.mxu0  ;;  %v1321_v53 = vpop.f32.mrf.mxu1 }
 0x135   : > { %1614 = vst [vmem:[%s2836_s7 + $0x120] sm:$0xff] %v1486_v48  ;;  %1678 = vst [vmem:[%s2836_s7 + $0x320] sm:$0xff] %v1550_v49  ;;  %v1489_v54 = vmax.f32 %v1007_v50, 0.0  ;;  %v1553_v55 = vmax.f32 %v1327_v51, 0.0  ;;  %v1002_v56 = vadd.f32 %v2828_v8, %v1001_v52  ;;  %v1322_v57 = vadd.f32 %v2828_v8, %v1321_v53 }
 0x136   : > { %v2179_v58 = vpop.f32.mrf.mxu0  ;;  %v2275_v59 = vpop.f32.mrf.mxu1 }
 0x137   : > { %1617 = vst [vmem:[%s2836_s7 + $0x138] sm:$0xff] %v1489_v54  ;;  %1681 = vst [vmem:[%s2836_s7 + $0x338] sm:$0xff] %v1553_v55  ;;  %v1488_v60 = vmax.f32 %v1002_v56, 0.0  ;;  %v1552_v61 = vmax.f32 %v1322_v57, 0.0  ;;  %v1017_v62 = vadd.f32 %v2179_v58, %v2828_v8  ;;  %v1337_v63 = vadd.f32 %v2275_v59, %v2828_v8 }
 0x138   : > { %v1011_v0 = vpop.f32.mrf.mxu0  ;;  %v1331_v1 = vpop.f32.mrf.mxu1 }
 0x139   : > { %1616 = vst [vmem:[%s2836_s7 + $0x130] sm:$0xff] %v1488_v60  ;;  %1680 = vst [vmem:[%s2836_s7 + $0x330] sm:$0xff] %v1552_v61  ;;  %v1491_v2 = vmax.f32 %v1017_v62, 0.0  ;;  %v1555_v3 = vmax.f32 %v1337_v63, 0.0  ;;  %v1012_v4 = vadd.f32 %v2828_v8, %v1011_v0  ;;  %v1332_v5 = vadd.f32 %v2828_v8, %v1331_v1 }
 0x13a   : > { %v2182_v6 = vpop.f32.mrf.mxu0  ;;  %v2278_v7 = vpop.f32.mrf.mxu1 }
 0x13b   : > { %1619 = vst [vmem:[%s2836_s7 + $0x148] sm:$0xff] %v1491_v2  ;;  %1683 = vst [vmem:[%s2836_s7 + $0x348] sm:$0xff] %v1555_v3  ;;  %v1490_v9 = vmax.f32 %v1012_v4, 0.0  ;;  %v1554_v10 = vmax.f32 %v1332_v5, 0.0  ;;  %v1027_v11 = vadd.f32 %v2182_v6, %v2828_v8  ;;  %v1347_v12 = vadd.f32 %v2278_v7, %v2828_v8 }
 0x13c   : > { %v1021_v13 = vpop.f32.mrf.mxu0  ;;  %v1341_v14 = vpop.f32.mrf.mxu1 }
 0x13d   : > { %1618 = vst [vmem:[%s2836_s7 + $0x140] sm:$0xff] %v1490_v9  ;;  %1682 = vst [vmem:[%s2836_s7 + $0x340] sm:$0xff] %v1554_v10  ;;  %v1493_v15 = vmax.f32 %v1027_v11, 0.0  ;;  %v1557_v16 = vmax.f32 %v1347_v12, 0.0  ;;  %v1022_v17 = vadd.f32 %v2828_v8, %v1021_v13  ;;  %v1342_v18 = vadd.f32 %v2828_v8, %v1341_v14 }
 0x13e   : > { %v2185_v19 = vpop.f32.mrf.mxu0  ;;  %v2281_v20 = vpop.f32.mrf.mxu1 }
 0x13f   : > { %1621 = vst [vmem:[%s2836_s7 + $0x158] sm:$0xff] %v1493_v15  ;;  %1685 = vst [vmem:[%s2836_s7 + $0x358] sm:$0xff] %v1557_v16  ;;  %v1492_v21 = vmax.f32 %v1022_v17, 0.0  ;;  %v1556_v22 = vmax.f32 %v1342_v18, 0.0  ;;  %v1037_v23 = vadd.f32 %v2185_v19, %v2828_v8  ;;  %v1357_v24 = vadd.f32 %v2281_v20, %v2828_v8 }
 0x140   : > { %v1031_v25 = vpop.f32.mrf.mxu0  ;;  %v1351_v26 = vpop.f32.mrf.mxu1 }
 0x141   : > { %1620 = vst [vmem:[%s2836_s7 + $0x150] sm:$0xff] %v1492_v21  ;;  %1684 = vst [vmem:[%s2836_s7 + $0x350] sm:$0xff] %v1556_v22  ;;  %v1495_v27 = vmax.f32 %v1037_v23, 0.0  ;;  %v1559_v28 = vmax.f32 %v1357_v24, 0.0  ;;  %v1032_v29 = vadd.f32 %v2828_v8, %v1031_v25  ;;  %v1352_v30 = vadd.f32 %v2828_v8, %v1351_v26 }
 0x142   : > { %v2188_v31 = vpop.f32.mrf.mxu0  ;;  %v2284_v32 = vpop.f32.mrf.mxu1 }
 0x143   : > { %1623 = vst [vmem:[%s2836_s7 + $0x168] sm:$0xff] %v1495_v27  ;;  %1687 = vst [vmem:[%s2836_s7 + $0x368] sm:$0xff] %v1559_v28  ;;  %v1494_v33 = vmax.f32 %v1032_v29, 0.0  ;;  %v1558_v34 = vmax.f32 %v1352_v30, 0.0  ;;  %v1047_v35 = vadd.f32 %v2188_v31, %v2828_v8  ;;  %v1367_v36 = vadd.f32 %v2284_v32, %v2828_v8 }
 0x144   : > { %v1041_v37 = vpop.f32.mrf.mxu0  ;;  %v1361_v38 = vpop.f32.mrf.mxu1 }
 0x145   : > { %1622 = vst [vmem:[%s2836_s7 + $0x160] sm:$0xff] %v1494_v33  ;;  %1686 = vst [vmem:[%s2836_s7 + $0x360] sm:$0xff] %v1558_v34  ;;  %v1497_v39 = vmax.f32 %v1047_v35, 0.0  ;;  %v1561_v40 = vmax.f32 %v1367_v36, 0.0  ;;  %v1042_v41 = vadd.f32 %v2828_v8, %v1041_v37  ;;  %v1362_v42 = vadd.f32 %v2828_v8, %v1361_v38 }
 0x146   : > { %v2191_v43 = vpop.f32.mrf.mxu0  ;;  %v2287_v44 = vpop.f32.mrf.mxu1 }
 0x147   : > { %1625 = vst [vmem:[%s2836_s7 + $0x178] sm:$0xff] %v1497_v39  ;;  %1689 = vst [vmem:[%s2836_s7 + $0x378] sm:$0xff] %v1561_v40  ;;  %v1496_v45 = vmax.f32 %v1042_v41, 0.0  ;;  %v1560_v46 = vmax.f32 %v1362_v42, 0.0  ;;  %v1057_v47 = vadd.f32 %v2191_v43, %v2828_v8  ;;  %v1377_v48 = vadd.f32 %v2287_v44, %v2828_v8 }
 0x148   : > { %v1051_v49 = vpop.f32.mrf.mxu0  ;;  %v1371_v50 = vpop.f32.mrf.mxu1 }
 0x149   : > { %1624 = vst [vmem:[%s2836_s7 + $0x170] sm:$0xff] %v1496_v45  ;;  %1688 = vst [vmem:[%s2836_s7 + $0x370] sm:$0xff] %v1560_v46  ;;  %v1499_v51 = vmax.f32 %v1057_v47, 0.0  ;;  %v1563_v52 = vmax.f32 %v1377_v48, 0.0  ;;  %v1052_v53 = vadd.f32 %v2828_v8, %v1051_v49  ;;  %v1372_v54 = vadd.f32 %v2828_v8, %v1371_v50 }
 0x14a   : > { %v2194_v55 = vpop.f32.mrf.mxu0  ;;  %v2290_v56 = vpop.f32.mrf.mxu1 }
 0x14b   : > { %1627 = vst [vmem:[%s2836_s7 + $0x188] sm:$0xff] %v1499_v51  ;;  %1691 = vst [vmem:[%s2836_s7 + $0x388] sm:$0xff] %v1563_v52  ;;  %v1498_v57 = vmax.f32 %v1052_v53, 0.0  ;;  %v1562_v58 = vmax.f32 %v1372_v54, 0.0  ;;  %v1067_v59 = vadd.f32 %v2194_v55, %v2828_v8  ;;  %v1387_v60 = vadd.f32 %v2290_v56, %v2828_v8 }
 0x14c   : > { %v1061_v61 = vpop.f32.mrf.mxu0  ;;  %v1381_v62 = vpop.f32.mrf.mxu1 }
 0x14d   : > { %1626 = vst [vmem:[%s2836_s7 + $0x180] sm:$0xff] %v1498_v57  ;;  %1690 = vst [vmem:[%s2836_s7 + $0x380] sm:$0xff] %v1562_v58  ;;  %v1501_v63 = vmax.f32 %v1067_v59, 0.0  ;;  %v1565_v0 = vmax.f32 %v1387_v60, 0.0  ;;  %v1062_v1 = vadd.f32 %v2828_v8, %v1061_v61  ;;  %v1382_v2 = vadd.f32 %v2828_v8, %v1381_v62 }
 0x14e   : > { %v2197_v3 = vpop.f32.mrf.mxu0  ;;  %v2293_v4 = vpop.f32.mrf.mxu1 }
 0x14f   : > { %1629 = vst [vmem:[%s2836_s7 + $0x198] sm:$0xff] %v1501_v63  ;;  %1693 = vst [vmem:[%s2836_s7 + $0x398] sm:$0xff] %v1565_v0  ;;  %v1500_v5 = vmax.f32 %v1062_v1, 0.0  ;;  %v1564_v6 = vmax.f32 %v1382_v2, 0.0  ;;  %v1077_v7 = vadd.f32 %v2197_v3, %v2828_v8  ;;  %v1397_v9 = vadd.f32 %v2293_v4, %v2828_v8 }
 0x150   : > { %v1071_v10 = vpop.f32.mrf.mxu0  ;;  %v1391_v11 = vpop.f32.mrf.mxu1 }
 0x151   : > { %1628 = vst [vmem:[%s2836_s7 + $0x190] sm:$0xff] %v1500_v5  ;;  %1692 = vst [vmem:[%s2836_s7 + $0x390] sm:$0xff] %v1564_v6  ;;  %v1503_v12 = vmax.f32 %v1077_v7, 0.0  ;;  %v1567_v13 = vmax.f32 %v1397_v9, 0.0  ;;  %v1072_v14 = vadd.f32 %v2828_v8, %v1071_v10  ;;  %v1392_v15 = vadd.f32 %v2828_v8, %v1391_v11 }
 0x152   : > { %v2200_v16 = vpop.f32.mrf.mxu0  ;;  %v2296_v17 = vpop.f32.mrf.mxu1 }
 0x153   : > { %1631 = vst [vmem:[%s2836_s7 + $0x1a8] sm:$0xff] %v1503_v12  ;;  %1695 = vst [vmem:[%s2836_s7 + $0x3a8] sm:$0xff] %v1567_v13  ;;  %v1502_v18 = vmax.f32 %v1072_v14, 0.0  ;;  %v1566_v19 = vmax.f32 %v1392_v15, 0.0  ;;  %v1087_v20 = vadd.f32 %v2200_v16, %v2828_v8  ;;  %v1407_v21 = vadd.f32 %v2296_v17, %v2828_v8 }
 0x154   : > { %v1081_v22 = vpop.f32.mrf.mxu0  ;;  %v1401_v23 = vpop.f32.mrf.mxu1 }
 0x155   : > { %1630 = vst [vmem:[%s2836_s7 + $0x1a0] sm:$0xff] %v1502_v18  ;;  %1694 = vst [vmem:[%s2836_s7 + $0x3a0] sm:$0xff] %v1566_v19  ;;  %v1505_v24 = vmax.f32 %v1087_v20, 0.0  ;;  %v1569_v25 = vmax.f32 %v1407_v21, 0.0  ;;  %v1082_v26 = vadd.f32 %v2828_v8, %v1081_v22  ;;  %v1402_v27 = vadd.f32 %v2828_v8, %v1401_v23 }
 0x156   : > { %v2203_v28 = vpop.f32.mrf.mxu0  ;;  %v2299_v29 = vpop.f32.mrf.mxu1 }
 0x157   : > { %1633 = vst [vmem:[%s2836_s7 + $0x1b8] sm:$0xff] %v1505_v24  ;;  %1697 = vst [vmem:[%s2836_s7 + $0x3b8] sm:$0xff] %v1569_v25  ;;  %v1504_v30 = vmax.f32 %v1082_v26, 0.0  ;;  %v1568_v31 = vmax.f32 %v1402_v27, 0.0  ;;  %v1097_v32 = vadd.f32 %v2203_v28, %v2828_v8  ;;  %v1417_v33 = vadd.f32 %v2299_v29, %v2828_v8 }
 0x158   : > { %v1091_v34 = vpop.f32.mrf.mxu0  ;;  %v1411_v35 = vpop.f32.mrf.mxu1 }
 0x159   : > { %1632 = vst [vmem:[%s2836_s7 + $0x1b0] sm:$0xff] %v1504_v30  ;;  %1696 = vst [vmem:[%s2836_s7 + $0x3b0] sm:$0xff] %v1568_v31  ;;  %v1507_v36 = vmax.f32 %v1097_v32, 0.0  ;;  %v1571_v37 = vmax.f32 %v1417_v33, 0.0  ;;  %v1092_v38 = vadd.f32 %v2828_v8, %v1091_v34  ;;  %v1412_v39 = vadd.f32 %v2828_v8, %v1411_v35 }
 0x15a   : > { %v2206_v40 = vpop.f32.mrf.mxu0  ;;  %v2302_v41 = vpop.f32.mrf.mxu1 }
 0x15b   : > { %1635 = vst [vmem:[%s2836_s7 + $0x1c8] sm:$0xff] %v1507_v36  ;;  %1699 = vst [vmem:[%s2836_s7 + $0x3c8] sm:$0xff] %v1571_v37  ;;  %v1506_v42 = vmax.f32 %v1092_v38, 0.0  ;;  %v1570_v43 = vmax.f32 %v1412_v39, 0.0  ;;  %v1107_v44 = vadd.f32 %v2206_v40, %v2828_v8  ;;  %v1427_v45 = vadd.f32 %v2302_v41, %v2828_v8 }
 0x15c   : > { %v1101_v46 = vpop.f32.mrf.mxu0  ;;  %v1421_v47 = vpop.f32.mrf.mxu1 }
 0x15d   : > { %1634 = vst [vmem:[%s2836_s7 + $0x1c0] sm:$0xff] %v1506_v42  ;;  %1698 = vst [vmem:[%s2836_s7 + $0x3c0] sm:$0xff] %v1570_v43  ;;  %v1509_v48 = vmax.f32 %v1107_v44, 0.0  ;;  %v1573_v49 = vmax.f32 %v1427_v45, 0.0  ;;  %v1102_v50 = vadd.f32 %v2828_v8, %v1101_v46  ;;  %v1422_v51 = vadd.f32 %v2828_v8, %v1421_v47 }
 0x15e   : > { %v2209_v52 = vpop.f32.mrf.mxu0  ;;  %v2305_v53 = vpop.f32.mrf.mxu1 }
 0x15f   : > { %1637 = vst [vmem:[%s2836_s7 + $0x1d8] sm:$0xff] %v1509_v48  ;;  %1701 = vst [vmem:[%s2836_s7 + $0x3d8] sm:$0xff] %v1573_v49  ;;  %v1508_v54 = vmax.f32 %v1102_v50, 0.0  ;;  %v1572_v55 = vmax.f32 %v1422_v51, 0.0  ;;  %v1117_v56 = vadd.f32 %v2209_v52, %v2828_v8  ;;  %v1437_v57 = vadd.f32 %v2305_v53, %v2828_v8 }
 0x160   : > { %v1111_v58 = vpop.f32.mrf.mxu0  ;;  %v1431_v59 = vpop.f32.mrf.mxu1 }
 0x161   : > { %1636 = vst [vmem:[%s2836_s7 + $0x1d0] sm:$0xff] %v1508_v54  ;;  %1700 = vst [vmem:[%s2836_s7 + $0x3d0] sm:$0xff] %v1572_v55  ;;  %v1511_v60 = vmax.f32 %v1117_v56, 0.0  ;;  %v1575_v61 = vmax.f32 %v1437_v57, 0.0  ;;  %v1112_v62 = vadd.f32 %v2828_v8, %v1111_v58  ;;  %v1432_v63 = vadd.f32 %v2828_v8, %v1431_v59 }
 0x162   : > { %v2212_v0 = vpop.f32.mrf.mxu0  ;;  %v2308_v1 = vpop.f32.mrf.mxu1 }
 0x163   : > { %1639 = vst [vmem:[%s2836_s7 + $0x1e8] sm:$0xff] %v1511_v60  ;;  %1703 = vst [vmem:[%s2836_s7 + $0x3e8] sm:$0xff] %v1575_v61  ;;  %v1510_v2 = vmax.f32 %v1112_v62, 0.0  ;;  %v1574_v3 = vmax.f32 %v1432_v63, 0.0  ;;  %v1127_v4 = vadd.f32 %v2212_v0, %v2828_v8  ;;  %v1447_v5 = vadd.f32 %v2308_v1, %v2828_v8 }
 0x164   : > { %v1121_v6 = vpop.f32.mrf.mxu0  ;;  %v1441_v7 = vpop.f32.mrf.mxu1 }
 0x165   : > { %1638 = vst [vmem:[%s2836_s7 + $0x1e0] sm:$0xff] %v1510_v2  ;;  %1702 = vst [vmem:[%s2836_s7 + $0x3e0] sm:$0xff] %v1574_v3  ;;  %v1513_v9 = vmax.f32 %v1127_v4, 0.0  ;;  %v1577_v10 = vmax.f32 %v1447_v5, 0.0  ;;  %v1122_v11 = vadd.f32 %v2828_v8, %v1121_v6  ;;  %v1442_v12 = vadd.f32 %v2828_v8, %v1441_v7 }
 0x167   : > { %1641 = vst [vmem:[%s2836_s7 + $0x1f8] sm:$0xff] %v1513_v9  ;;  %1705 = vst [vmem:[%s2836_s7 + $0x3f8] sm:$0xff] %v1577_v10  ;;  %v1512_v13 = vmax.f32 %v1122_v11, 0.0  ;;  %v1576_v14 = vmax.f32 %v1442_v12, 0.0 }
 0x169   : > { %1640 = vst [vmem:[%s2836_s7 + $0x1f0] sm:$0xff] %v1512_v13  ;;  %1704 = vst [vmem:[%s2836_s7 + $0x3f0] sm:$0xff] %v1576_v14 }
 0x16a   : > { %2395 = shalt.err (!%p2392_p5)
}
 0x16b   : > { %s2396_s27 = scalar_lea.hbm %s3091_s18, 16384  ;;  %s2400_s30 = scalar_lea.hbm %s3149_s3, 32768 }
 0x16c   : > { %p2397_p6 = scmp.ne.s32.totalorder %s3091_s18, %s2396_s27  ;;  %p2401_p10 = scmp.lt.s32.totalorder %s3091_s18, %s3149_s3 }
 0x16d   : > { %p2402_p11 = scmp.lt.s32.totalorder %s2400_s30, %s2396_s27 }
 0x16e   : > { %p2398_p7 = pnand %p2397_p6, %p2523_p4 }
 0x16f   : > { %p2403_p12 = por %p2402_p11, %p2401_p10 }
 0x170   : > { %p2399_p9 = pneg %p2398_p7 }
 0x172   : > { %p2404_p13 = pnand %p2403_p12, %p2399_p9 }
 0x174   : > { %2407 = shalt.err (!%p2404_p13)
}
 0x175   : > { %s2461_s6 = smov 128   ;;  %s2462_s7 = smov 8  }
 0x176   : > { %2325 = dma.vmem_to_hbm [thread:$0]  (%p2523_p4), %s3093_s9, 16384, %s3091_s18, %s3101_s15, %s2461_s6, %s2461_s6, %s2462_s7  }
 0x177 PF: > { %p2331_p0 = scmp.ge.s32.totalorder %s2458_s17, 2  ;;  %s1736_s8 = sand.u32 1, %s2438_s12  }
 0x178   : > { %s1737_s10 = scalar_lea.sflag [#allocation3], %s1736_s8 }
 0x179   : > { %p2328_p1 = pnand %p2331_p0, %p2530_p8 }
 0x17b   : > { %p2329_p2 = pneg %p2328_p1 }
 0x17d   : > { %2433 = dma.done.wait (%p2329_p2), %s1737_s10, 16384  }
 0x17e   : > { %2435 = vsyncadd (%p2329_p2), %s1737_s10, 4294950912  ;;  %s16_s17 = sadd.s32 1, %s2458_s17   ;;  %s3152_s12 = smov %s2442_s13 }
 0x17f   : > { %p13_p3 = scmp.ge.s32.totalorder %s16_s17, 4   ;;  %s3153_s13 = smov %s2446_s14 }
 0x180   : > { %s3154_s14 = smov %s2536_s25  ;;  %s3155_s15 = smov %s2454_s16 }
 0x181   : > { %s3156_s16 = smov %s3158_s20  ;;  %15 = sbr.rel (!%p13_p3) target bundleno = 4 (0x4), region = 73 }
 0x186   :  { %1742 = vsyncpa [#allocation3], 1 }
 0x187   :  { %1744 = vsyncpa [#allocation3 + $0x1], 1 }

</bundles_post_ra>
